<compile_context>
chip_gen: v5e
topology: v5e:2x2
jax: 0.10.0
libtpu: 0.0.40
codegen_flags: <defaults>
</compile_context>

<pallas_src>
import functools
import math

import jax
import jax.numpy as jnp
from jax.experimental import pallas as pl
from jax.experimental.pallas import tpu as pltpu

INV_SQRT2 = 1.0 / math.sqrt(2.0)


# ----------------------------------------------------------------------------
# Combined Haar analysis matrices (level-1, 'zero' mode, even sizes):
#   gh = [Lh ; Hh]  (h, h)  applied from the left  (rows: [low ; high])
#   gw = [Lw | Hw]  (w, w)  applied from the right (cols: [low | high])
#   low[k]  = (x[2k] + x[2k+1]) / sqrt(2),  high[k] = (x[2k] - x[2k+1]) / sqrt(2)
# (high-pass sign convention only affects the sigmoid-mask term; it matches the
#  pure-JAX reference below.)
# ----------------------------------------------------------------------------
def _haar_analysis_mats(h, w):
    r = jnp.float32(INV_SQRT2)
    eh = jnp.eye(h // 2, dtype=jnp.float32)
    ew = jnp.eye(w // 2, dtype=jnp.float32)
    lh = jnp.kron(eh, jnp.array([[1.0, 1.0]], jnp.float32)) * r      # (h/2, h)
    hh = jnp.kron(eh, jnp.array([[1.0, -1.0]], jnp.float32)) * r     # (h/2, h)
    lw = jnp.kron(ew, jnp.array([[1.0], [1.0]], jnp.float32)) * r    # (w, w/2)
    hw_ = jnp.kron(ew, jnp.array([[1.0], [-1.0]], jnp.float32)) * r  # (w, w/2)
    gh = jnp.concatenate([lh, hh], axis=0)                           # (h, h)
    gw = jnp.concatenate([lw, hw_], axis=1)                          # (w, w)
    return gh, gw


# ----------------------------------------------------------------------------
# Fused per-stage kernel.  One grid step = one image (teacher + student).
#   x_ref:   (1, 2C, H, W)  — channels [0:C] teacher, [C:2C] student
#   ghJ/gwJ: combined Haar matrices per level (VMEM)
#   tok_ref: (3*T*C,) in SMEM — mask_token[1:4] flattened (lvl-major, token, chan)
#   out_ref: (1, 1, 1)       — per-image loss (already mean-normalized, 3 levels)
# ----------------------------------------------------------------------------
def _stage_kernel(x_ref, gh1, gw1, gh2, gw2, gh3, gw3, tok_ref, out_ref, *,
                  C, T, inv_denoms):
    cur = x_ref[0]                         # (2C, H, W), teacher channels first
    B2 = 2 * C
    gh_refs = (gh1, gh2, gh3)
    gw_refs = (gw1, gw2, gw3)
    total = jnp.float32(0.0)

    for lvl in range(3):                   # static unroll over the 3 DWT levels
        Hc, Wc = cur.shape[1], cur.shape[2]
        Hn, Wn = Hc // 2, Wc // 2
        gh = gh_refs[lvl][...]             # (Hc, Hc)
        gw = gw_refs[lvl][...]             # (Wc, Wc)

        # --- W-direction analysis -------------------------------------------
        if Hc % 8 == 0:
            # Merge (channel, row) into one leading axis: layout-preserving when
            # Hc is a sublane multiple -> ONE tall MXU matmul instead of 2C
            # small batched matmuls + a broadcast (2C, Wc, Wc) weight copy.
            rw = jnp.dot(cur.reshape(B2 * Hc, Wc), gw,
                         preferred_element_type=jnp.float32)
            rw = rw.reshape(B2, Hc, Wc)                          # (B2, Hc, Wc)
        else:
            # Unaligned (tiny) level: keep the known-good batched-dot path.
            gw_b = jnp.broadcast_to(gw[None], (B2, Wc, Wc))
            rw = jax.lax.dot_general(cur, gw_b, (((2,), (1,)), ((0,), (0,))),
                                     preferred_element_type=jnp.float32)

        # --- H-direction analysis (batched left-multiply) --------------------
        # TODO(synk): this could also become one merged 2D matmul via a
        #             minor-dims transpose; kept as a batched dot for lowering
        #             safety (transposes of tiny unaligned tiles are risky).
        gh_b = jnp.broadcast_to(gh[None], (B2, Hc, Hc))
        y = jax.lax.dot_general(gh_b, rw, (((2,), (1,)), ((0,), (0,))),
                                preferred_element_type=jnp.float32)  # (B2,Hc,Wc)

        # quadrants: rows [:Hn] = low-H, cols [:Wn] = low-W
        b1 = y[:, Hn:, :Wn]                                 # (high-H, low-W)
        b2 = y[:, :Hn, Wn:]                                 # (low-H, high-W)
        b3 = y[:, Hn:, Wn:]                                 # (high-H, high-W)

        t1, s1 = b1[:C], b1[C:]
        t2, s2 = b2[:C], b2[C:]
        t3, s3 = b3[:C], b3[C:]

        st = t1 + t2 + t3                                   # teacher orient. sum (C,Hn,Wn)
        dsum = jnp.sum(jnp.abs(s1 - t1) + jnp.abs(s2 - t2) + jnp.abs(s3 - t3),
                       axis=0)                              # (Hn, Wn)

        # mask = sum_t sigmoid(token_t . slice); T*C is tiny for FreeKD defaults,
        # so the token contraction is done as scalar-broadcast MACs on the VPU.
        # TODO(synk): for large channel counts fold this (linear) contraction
        #             into the DWT matmuls instead of the scalar-MAC loop.
        base = lvl * T * C
        msum = None
        for t in range(T):
            attn_t = None
            for c in range(C):
                term = tok_ref[base + t * C + c] * st[c]
                attn_t = term if attn_t is None else attn_t + term
            sig = jax.nn.sigmoid(attn_t)
            msum = sig if msum is None else msum + sig      # (Hn, Wn)

        total = total + jnp.sum(msum * dsum) * inv_denoms[lvl]

        if lvl < 2:
            cur = y[:, :Hn, :Wn]                            # LL -> next level

    out_ref[...] = total * jnp.ones((1, 1, 1), jnp.float32)


# ----------------------------------------------------------------------------
# Per-stage wrapper: one pallas_call, grid over batch ("parallel").
# ----------------------------------------------------------------------------
def freekd_stage_loss(y_s, y_t, mask_token):
    N, C, H, W = y_s.shape
    assert y_t.shape == y_s.shape
    assert H % 8 == 0 and W % 8 == 0, "3 even-sized haar levels need H, W % 8 == 0"
    # TODO(synk): odd spatial sizes (pytorch_wavelets zero-padding path) not handled.
    T = mask_token.shape[1]
    B2 = 2 * C

    # teacher channels first, student channels second
    x_all = jnp.concatenate([y_t, y_s], axis=1).astype(jnp.float32)  # (N, 2C, H, W)
    # flatten to 1-D so SMEM does not pad rows to 8 / cols to 128
    tok_flat = mask_token[1:4].astype(jnp.float32).reshape(-1)       # (3*T*C,)

    ghs, gws, inv_den = [], [], []
    hc, wc = H, W
    for _ in range(3):
        gh, gw = _haar_analysis_mats(hc, wc)
        ghs.append(gh)
        gws.append(gw)
        hc, wc = hc // 2, wc // 2
        inv_den.append(1.0 / float(N * T * C * 3 * hc * wc))         # l1 mean denom

    kernel = functools.partial(_stage_kernel, C=C, T=T, inv_denoms=tuple(inv_den))

    mats = [ghs[0], gws[0], ghs[1], gws[1], ghs[2], gws[2]]
    x_spec = pl.BlockSpec((1, B2, H, W), lambda n: (n, 0, 0, 0))
    const_specs = [pl.BlockSpec(m.shape, lambda n: (0, 0)) for m in mats]
    tok_spec = pl.BlockSpec(memory_space=pltpu.MemorySpace.SMEM)
    out_spec = pl.BlockSpec((1, 1, 1), lambda n: (n, 0, 0))

    blk_bytes = 4 * B2 * H * W
    const_bytes = 4 * (sum(int(m.size) for m in mats) + int(tok_flat.size))
    vmem_limit = int(min(100 * 2**20,
                         max(32 * 2**20, 16 * blk_bytes + 4 * const_bytes + (2 << 20))))

    per_image = pl.pallas_call(
        kernel,
        out_shape=jax.ShapeDtypeStruct((N, 1, 1), jnp.float32),
        grid=(N,),
        in_specs=[x_spec] + const_specs + [tok_spec],
        out_specs=out_spec,
        compiler_params=pltpu.CompilerParams(
            dimension_semantics=("parallel",),
            vmem_limit_bytes=vmem_limit),
    )(x_all, *mats, tok_flat)

    return jnp.sum(per_image)


def freekd_loss(y_s_list, y_t_list, mask_tokens, loss_weight=1.0):
    if not isinstance(y_s_list, (tuple, list)):
        y_s_list, y_t_list, mask_tokens = (y_s_list,), (y_t_list,), (mask_tokens,)
    assert len(y_s_list) == len(y_t_list) == len(mask_tokens)
    total = jnp.float32(0.0)
    for y_s, y_t, tok in zip(y_s_list, y_t_list, mask_tokens):
        total = total + freekd_stage_loss(y_s, y_t, tok)
    return loss_weight * total


# ----------------------------------------------------------------------------
# Pure-JAX reference (PyTorch-style broadcasting, no factorization) for checking.
# ----------------------------------------------------------------------------
def _reference_loss(y_s_list, y_t_list, mask_tokens, loss_weight=1.0):
    def dwt_high_levels(x):
        levels, cur = [], x
        for _ in range(3):
            lo = (cur[..., 0::2] + cur[..., 1::2]) * INV_SQRT2
            hi = (cur[..., 0::2] - cur[..., 1::2]) * INV_SQRT2
            ll = (lo[..., 0::2, :] + lo[..., 1::2, :]) * INV_SQRT2
            lh = (lo[..., 0::2, :] - lo[..., 1::2, :]) * INV_SQRT2
            hl = (hi[..., 0::2, :] + hi[..., 1::2, :]) * INV_SQRT2
            hh = (hi[..., 0::2, :] - hi[..., 1::2, :]) * INV_SQRT2
            levels.append(jnp.stack([lh, hl, hh], axis=2))
            cur = ll
        return levels

    total = 0.0
    for y_s, y_t, tok in zip(y_s_list, y_t_list, mask_tokens):
        hs, ht = dwt_high_levels(y_s), dwt_high_levels(y_t)
        for j in range(3):
            t, s = ht[j], hs[j]
            n, c, _, hj, wj = t.shape
            k = t.sum(axis=2).reshape(n, c, hj * wj)
            attn = jax.nn.sigmoid(jnp.einsum('tc,nch->nth', tok[j + 1], k))
            attn = attn.reshape(n, -1, hj, wj)
            out_t = t[:, None] * attn[:, :, None, None]
            out_s = s[:, None] * attn[:, :, None, None]
            total = total + jnp.mean(jnp.abs(out_s - out_t))
    return loss_weight * total


if __name__ == "__main__":
    key = jax.random.PRNGKey(0)
    N, C, H, W = 2, 4, 16, 16
    num_tokens = 2                                   # FreeKDLoss default

    k1, k2, k3 = jax.random.split(key, 3)
    y_s = jax.random.normal(k1, (N, C, H, W), jnp.float32)
    y_t = jax.random.normal(k2, (N, C, H, W), jnp.float32)
    # nn.Parameter(torch.randn(4, num_tokens, C).normal_(0, 0.01)) — synthetic init
    mask_token = 0.01 * jax.random.normal(k3, (4, num_tokens, C), jnp.float32)

    loss = freekd_loss([y_s], [y_t], [mask_token], loss_weight=1.0)
    loss = jax.block_until_ready(loss)

    ref = jax.block_until_ready(
        _reference_loss([y_s], [y_t], [mask_token], loss_weight=1.0))
    assert jnp.allclose(loss, ref, rtol=3e-3, atol=2e-5), (float(loss), float(ref))

    print("KERNEL_OK")
</pallas_src>

<mosaic_0001>
module attributes {stable_mosaic.version = 11 : i64} {
  func.func @_stage_kernel(%arg0: i32, %arg1: memref<1x8x16x16xf32, #tpu.memory_space<vmem>>, %arg2: memref<16x16xf32, #tpu.memory_space<vmem>>, %arg3: memref<16x16xf32, #tpu.memory_space<vmem>>, %arg4: memref<8x8xf32, #tpu.memory_space<vmem>>, %arg5: memref<8x8xf32, #tpu.memory_space<vmem>>, %arg6: memref<4x4xf32, #tpu.memory_space<vmem>>, %arg7: memref<4x4xf32, #tpu.memory_space<vmem>>, %arg8: memref<24xf32, #tpu.memory_space<smem>>, %arg9: memref<1x1x1xf32, #tpu.memory_space<vmem>>) attributes {dimension_semantics = [#tpu.dimension_semantics<parallel>], iteration_bounds = array<i64: 2>, scalar_prefetch = 0 : i64, scratch_operands = 0 : i64, tpu.core_type = #tpu.core_type<tc>, window_params = [{transform_indices = @transform_0, window_bounds = array<i64: 1, 8, 16, 16>}, {pipeline_mode = #tpu.pipeline_mode<synchronous>, transform_indices = @transform_1, window_bounds = array<i64: 16, 16>}, {pipeline_mode = #tpu.pipeline_mode<synchronous>, transform_indices = @transform_2, window_bounds = array<i64: 16, 16>}, {pipeline_mode = #tpu.pipeline_mode<synchronous>, transform_indices = @transform_3, window_bounds = array<i64: 8, 8>}, {pipeline_mode = #tpu.pipeline_mode<synchronous>, transform_indices = @transform_4, window_bounds = array<i64: 8, 8>}, {pipeline_mode = #tpu.pipeline_mode<synchronous>, transform_indices = @transform_5, window_bounds = array<i64: 4, 4>}, {pipeline_mode = #tpu.pipeline_mode<synchronous>, transform_indices = @transform_6, window_bounds = array<i64: 4, 4>}, {transform_indices = @transform_7, window_bounds = array<i64: 24>}, {transform_indices = @transform_8, window_bounds = array<i64: 1, 1, 1>}]} {
    %c0 = arith.constant 0 : index
    %c0_0 = arith.constant 0 : index
    %c0_1 = arith.constant 0 : index
    %c0_2 = arith.constant 0 : index
    %0 = vector.load %arg1[%c0, %c0_0, %c0_1, %c0_2] : memref<1x8x16x16xf32, #tpu.memory_space<vmem>>, vector<1x8x16x16xf32>
    %1 = vector.shape_cast %0 : vector<1x8x16x16xf32> to vector<8x16x16xf32>
    %c0_3 = arith.constant 0 : index
    %c0_4 = arith.constant 0 : index
    %2 = vector.load %arg2[%c0_3, %c0_4] : memref<16x16xf32, #tpu.memory_space<vmem>>, vector<16x16xf32>
    %c0_5 = arith.constant 0 : index
    %c0_6 = arith.constant 0 : index
    %3 = vector.load %arg3[%c0_5, %c0_6] : memref<16x16xf32, #tpu.memory_space<vmem>>, vector<16x16xf32>
    %4 = vector.shape_cast %1 : vector<8x16x16xf32> to vector<128x16xf32>
    %cst = arith.constant dense<0.000000e+00> : vector<128x16xf32>
    %5 = tpu.matmul %4, %3, %cst {dimension_numbers = #tpu.dot_dimension_numbers<[1], [0], [0], [1], [0, 0, 1, 1], [], []>} : vector<128x16xf32>, vector<16x16xf32>, vector<128x16xf32> -> vector<128x16xf32>
    %6 = vector.shape_cast %5 : vector<128x16xf32> to vector<8x16x16xf32>
    %7 = vector.shape_cast %2 : vector<16x16xf32> to vector<1x16x16xf32>
    %8 = vector.shape_cast %7 : vector<1x16x16xf32> to vector<1x16x16xf32>
    %9 = vector.broadcast %8 : vector<1x16x16xf32> to vector<8x16x16xf32>
    %cst_7 = arith.constant dense<0.000000e+00> : vector<8x16x16xf32>
    %10 = tpu.matmul %9, %6, %cst_7 {dimension_numbers = #tpu.dot_dimension_numbers<[2], [1], [1], [2], [0, 0, 0, 1, 1, 2], [0], [0]>} : vector<8x16x16xf32>, vector<8x16x16xf32>, vector<8x16x16xf32> -> vector<8x16x16xf32>
    %11 = vector.extract_strided_slice %10 {offsets = [0, 8, 0], sizes = [8, 8, 8], strides = [1, 1, 1]} : vector<8x16x16xf32> to vector<8x8x8xf32>
    %12 = vector.extract_strided_slice %10 {offsets = [0, 0, 8], sizes = [8, 8, 8], strides = [1, 1, 1]} : vector<8x16x16xf32> to vector<8x8x8xf32>
    %13 = vector.extract_strided_slice %10 {offsets = [0, 8, 8], sizes = [8, 8, 8], strides = [1, 1, 1]} : vector<8x16x16xf32> to vector<8x8x8xf32>
    %14 = vector.extract_strided_slice %11 {offsets = [0, 0, 0], sizes = [4, 8, 8], strides = [1, 1, 1]} : vector<8x8x8xf32> to vector<4x8x8xf32>
    %15 = vector.extract_strided_slice %11 {offsets = [4, 0, 0], sizes = [4, 8, 8], strides = [1, 1, 1]} : vector<8x8x8xf32> to vector<4x8x8xf32>
    %16 = vector.extract_strided_slice %12 {offsets = [0, 0, 0], sizes = [4, 8, 8], strides = [1, 1, 1]} : vector<8x8x8xf32> to vector<4x8x8xf32>
    %17 = vector.extract_strided_slice %12 {offsets = [4, 0, 0], sizes = [4, 8, 8], strides = [1, 1, 1]} : vector<8x8x8xf32> to vector<4x8x8xf32>
    %18 = vector.extract_strided_slice %13 {offsets = [0, 0, 0], sizes = [4, 8, 8], strides = [1, 1, 1]} : vector<8x8x8xf32> to vector<4x8x8xf32>
    %19 = vector.extract_strided_slice %13 {offsets = [4, 0, 0], sizes = [4, 8, 8], strides = [1, 1, 1]} : vector<8x8x8xf32> to vector<4x8x8xf32>
    %20 = arith.addf %14, %16 : vector<4x8x8xf32>
    %21 = arith.addf %20, %18 : vector<4x8x8xf32>
    %22 = arith.subf %15, %14 : vector<4x8x8xf32>
    %23 = math.absf %22 : vector<4x8x8xf32>
    %24 = arith.subf %17, %16 : vector<4x8x8xf32>
    %25 = math.absf %24 : vector<4x8x8xf32>
    %26 = arith.addf %23, %25 : vector<4x8x8xf32>
    %27 = arith.subf %19, %18 : vector<4x8x8xf32>
    %28 = math.absf %27 : vector<4x8x8xf32>
    %29 = arith.addf %26, %28 : vector<4x8x8xf32>
    %cst_8 = arith.constant dense<0.000000e+00> : vector<8x8xf32>
    %30 = vector.multi_reduction <add>, %29, %cst_8 [0] : vector<4x8x8xf32> to vector<8x8xf32>
    %c0_9 = arith.constant 0 : index
    %31 = memref.load %arg8[%c0_9] : memref<24xf32, #tpu.memory_space<smem>>
    %32 = vector.extract_strided_slice %21 {offsets = [0, 0, 0], sizes = [1, 8, 8], strides = [1, 1, 1]} : vector<4x8x8xf32> to vector<1x8x8xf32>
    %33 = vector.shape_cast %32 : vector<1x8x8xf32> to vector<8x8xf32>
    %34 = vector.broadcast %31 : f32 to vector<8x8xf32>
    %35 = arith.mulf %34, %33 : vector<8x8xf32>
    %c1 = arith.constant 1 : index
    %36 = memref.load %arg8[%c1] : memref<24xf32, #tpu.memory_space<smem>>
    %37 = vector.extract_strided_slice %21 {offsets = [1, 0, 0], sizes = [1, 8, 8], strides = [1, 1, 1]} : vector<4x8x8xf32> to vector<1x8x8xf32>
    %38 = vector.shape_cast %37 : vector<1x8x8xf32> to vector<8x8xf32>
    %39 = vector.broadcast %36 : f32 to vector<8x8xf32>
    %40 = arith.mulf %39, %38 : vector<8x8xf32>
    %41 = arith.addf %35, %40 : vector<8x8xf32>
    %c2 = arith.constant 2 : index
    %42 = memref.load %arg8[%c2] : memref<24xf32, #tpu.memory_space<smem>>
    %43 = vector.extract_strided_slice %21 {offsets = [2, 0, 0], sizes = [1, 8, 8], strides = [1, 1, 1]} : vector<4x8x8xf32> to vector<1x8x8xf32>
    %44 = vector.shape_cast %43 : vector<1x8x8xf32> to vector<8x8xf32>
    %45 = vector.broadcast %42 : f32 to vector<8x8xf32>
    %46 = arith.mulf %45, %44 : vector<8x8xf32>
    %47 = arith.addf %41, %46 : vector<8x8xf32>
    %c3 = arith.constant 3 : index
    %48 = memref.load %arg8[%c3] : memref<24xf32, #tpu.memory_space<smem>>
    %49 = vector.extract_strided_slice %21 {offsets = [3, 0, 0], sizes = [1, 8, 8], strides = [1, 1, 1]} : vector<4x8x8xf32> to vector<1x8x8xf32>
    %50 = vector.shape_cast %49 : vector<1x8x8xf32> to vector<8x8xf32>
    %51 = vector.broadcast %48 : f32 to vector<8x8xf32>
    %52 = arith.mulf %51, %50 : vector<8x8xf32>
    %53 = arith.addf %47, %52 : vector<8x8xf32>
    %54 = arith.negf %53 : vector<8x8xf32>
    %55 = math.exp %54 : vector<8x8xf32>
    %cst_10 = arith.constant 1.000000e+00 : f32
    %56 = vector.broadcast %cst_10 : f32 to vector<8x8xf32>
    %57 = arith.addf %56, %55 : vector<8x8xf32>
    %58 = arith.divf %56, %57 : vector<8x8xf32>
    %c4 = arith.constant 4 : index
    %59 = memref.load %arg8[%c4] : memref<24xf32, #tpu.memory_space<smem>>
    %60 = vector.extract_strided_slice %21 {offsets = [0, 0, 0], sizes = [1, 8, 8], strides = [1, 1, 1]} : vector<4x8x8xf32> to vector<1x8x8xf32>
    %61 = vector.shape_cast %60 : vector<1x8x8xf32> to vector<8x8xf32>
    %62 = vector.broadcast %59 : f32 to vector<8x8xf32>
    %63 = arith.mulf %62, %61 : vector<8x8xf32>
    %c5 = arith.constant 5 : index
    %64 = memref.load %arg8[%c5] : memref<24xf32, #tpu.memory_space<smem>>
    %65 = vector.extract_strided_slice %21 {offsets = [1, 0, 0], sizes = [1, 8, 8], strides = [1, 1, 1]} : vector<4x8x8xf32> to vector<1x8x8xf32>
    %66 = vector.shape_cast %65 : vector<1x8x8xf32> to vector<8x8xf32>
    %67 = vector.broadcast %64 : f32 to vector<8x8xf32>
    %68 = arith.mulf %67, %66 : vector<8x8xf32>
    %69 = arith.addf %63, %68 : vector<8x8xf32>
    %c6 = arith.constant 6 : index
    %70 = memref.load %arg8[%c6] : memref<24xf32, #tpu.memory_space<smem>>
    %71 = vector.extract_strided_slice %21 {offsets = [2, 0, 0], sizes = [1, 8, 8], strides = [1, 1, 1]} : vector<4x8x8xf32> to vector<1x8x8xf32>
    %72 = vector.shape_cast %71 : vector<1x8x8xf32> to vector<8x8xf32>
    %73 = vector.broadcast %70 : f32 to vector<8x8xf32>
    %74 = arith.mulf %73, %72 : vector<8x8xf32>
    %75 = arith.addf %69, %74 : vector<8x8xf32>
    %c7 = arith.constant 7 : index
    %76 = memref.load %arg8[%c7] : memref<24xf32, #tpu.memory_space<smem>>
    %77 = vector.extract_strided_slice %21 {offsets = [3, 0, 0], sizes = [1, 8, 8], strides = [1, 1, 1]} : vector<4x8x8xf32> to vector<1x8x8xf32>
    %78 = vector.shape_cast %77 : vector<1x8x8xf32> to vector<8x8xf32>
    %79 = vector.broadcast %76 : f32 to vector<8x8xf32>
    %80 = arith.mulf %79, %78 : vector<8x8xf32>
    %81 = arith.addf %75, %80 : vector<8x8xf32>
    %82 = arith.negf %81 : vector<8x8xf32>
    %83 = math.exp %82 : vector<8x8xf32>
    %cst_11 = arith.constant 1.000000e+00 : f32
    %84 = vector.broadcast %cst_11 : f32 to vector<8x8xf32>
    %85 = arith.addf %84, %83 : vector<8x8xf32>
    %86 = arith.divf %84, %85 : vector<8x8xf32>
    %87 = arith.addf %58, %86 : vector<8x8xf32>
    %88 = arith.mulf %87, %30 : vector<8x8xf32>
    %89 = vector.shape_cast %88 : vector<8x8xf32> to vector<1x8x8xf32>
    %cst_12 = arith.constant dense<0.000000e+00> : vector<1xf32>
    %90 = vector.multi_reduction <add>, %89, %cst_12 [1, 2] : vector<1x8x8xf32> to vector<1xf32>
    %91 = vector.shape_cast %90 : vector<1xf32> to vector<1x1x1xf32>
    %92 = vector.extract %91[0, 0, 0] : f32 from vector<1x1x1xf32>
    %cst_13 = arith.constant 3.25520843E-4 : f32
    %93 = arith.mulf %92, %cst_13 : f32
    %cst_14 = arith.constant 0.000000e+00 : f32
    %94 = arith.addf %cst_14, %93 : f32
    %95 = vector.extract_strided_slice %10 {offsets = [0, 0, 0], sizes = [8, 8, 8], strides = [1, 1, 1]} : vector<8x16x16xf32> to vector<8x8x8xf32>
    %c0_15 = arith.constant 0 : index
    %c0_16 = arith.constant 0 : index
    %96 = vector.load %arg4[%c0_15, %c0_16] : memref<8x8xf32, #tpu.memory_space<vmem>>, vector<8x8xf32>
    %c0_17 = arith.constant 0 : index
    %c0_18 = arith.constant 0 : index
    %97 = vector.load %arg5[%c0_17, %c0_18] : memref<8x8xf32, #tpu.memory_space<vmem>>, vector<8x8xf32>
    %98 = vector.shape_cast %95 : vector<8x8x8xf32> to vector<64x8xf32>
    %cst_19 = arith.constant dense<0.000000e+00> : vector<64x8xf32>
    %99 = tpu.matmul %98, %97, %cst_19 {dimension_numbers = #tpu.dot_dimension_numbers<[1], [0], [0], [1], [0, 0, 1, 1], [], []>} : vector<64x8xf32>, vector<8x8xf32>, vector<64x8xf32> -> vector<64x8xf32>
    %100 = vector.shape_cast %99 : vector<64x8xf32> to vector<8x8x8xf32>
    %101 = vector.shape_cast %96 : vector<8x8xf32> to vector<1x8x8xf32>
    %102 = vector.shape_cast %101 : vector<1x8x8xf32> to vector<1x8x8xf32>
    %103 = vector.broadcast %102 : vector<1x8x8xf32> to vector<8x8x8xf32>
    %cst_20 = arith.constant dense<0.000000e+00> : vector<8x8x8xf32>
    %104 = tpu.matmul %103, %100, %cst_20 {dimension_numbers = #tpu.dot_dimension_numbers<[2], [1], [1], [2], [0, 0, 0, 1, 1, 2], [0], [0]>} : vector<8x8x8xf32>, vector<8x8x8xf32>, vector<8x8x8xf32> -> vector<8x8x8xf32>
    %105 = vector.extract_strided_slice %104 {offsets = [0, 4, 0], sizes = [8, 4, 4], strides = [1, 1, 1]} : vector<8x8x8xf32> to vector<8x4x4xf32>
    %106 = vector.extract_strided_slice %104 {offsets = [0, 0, 4], sizes = [8, 4, 4], strides = [1, 1, 1]} : vector<8x8x8xf32> to vector<8x4x4xf32>
    %107 = vector.extract_strided_slice %104 {offsets = [0, 4, 4], sizes = [8, 4, 4], strides = [1, 1, 1]} : vector<8x8x8xf32> to vector<8x4x4xf32>
    %108 = vector.extract_strided_slice %105 {offsets = [0, 0, 0], sizes = [4, 4, 4], strides = [1, 1, 1]} : vector<8x4x4xf32> to vector<4x4x4xf32>
    %109 = vector.extract_strided_slice %105 {offsets = [4, 0, 0], sizes = [4, 4, 4], strides = [1, 1, 1]} : vector<8x4x4xf32> to vector<4x4x4xf32>
    %110 = vector.extract_strided_slice %106 {offsets = [0, 0, 0], sizes = [4, 4, 4], strides = [1, 1, 1]} : vector<8x4x4xf32> to vector<4x4x4xf32>
    %111 = vector.extract_strided_slice %106 {offsets = [4, 0, 0], sizes = [4, 4, 4], strides = [1, 1, 1]} : vector<8x4x4xf32> to vector<4x4x4xf32>
    %112 = vector.extract_strided_slice %107 {offsets = [0, 0, 0], sizes = [4, 4, 4], strides = [1, 1, 1]} : vector<8x4x4xf32> to vector<4x4x4xf32>
    %113 = vector.extract_strided_slice %107 {offsets = [4, 0, 0], sizes = [4, 4, 4], strides = [1, 1, 1]} : vector<8x4x4xf32> to vector<4x4x4xf32>
    %114 = arith.addf %108, %110 : vector<4x4x4xf32>
    %115 = arith.addf %114, %112 : vector<4x4x4xf32>
    %116 = arith.subf %109, %108 : vector<4x4x4xf32>
    %117 = math.absf %116 : vector<4x4x4xf32>
    %118 = arith.subf %111, %110 : vector<4x4x4xf32>
    %119 = math.absf %118 : vector<4x4x4xf32>
    %120 = arith.addf %117, %119 : vector<4x4x4xf32>
    %121 = arith.subf %113, %112 : vector<4x4x4xf32>
    %122 = math.absf %121 : vector<4x4x4xf32>
    %123 = arith.addf %120, %122 : vector<4x4x4xf32>
    %cst_21 = arith.constant dense<0.000000e+00> : vector<4x4xf32>
    %124 = vector.multi_reduction <add>, %123, %cst_21 [0] : vector<4x4x4xf32> to vector<4x4xf32>
    %c8 = arith.constant 8 : index
    %125 = memref.load %arg8[%c8] : memref<24xf32, #tpu.memory_space<smem>>
    %126 = vector.extract_strided_slice %115 {offsets = [0, 0, 0], sizes = [1, 4, 4], strides = [1, 1, 1]} : vector<4x4x4xf32> to vector<1x4x4xf32>
    %127 = vector.shape_cast %126 : vector<1x4x4xf32> to vector<4x4xf32>
    %128 = vector.broadcast %125 : f32 to vector<4x4xf32>
    %129 = arith.mulf %128, %127 : vector<4x4xf32>
    %c9 = arith.constant 9 : index
    %130 = memref.load %arg8[%c9] : memref<24xf32, #tpu.memory_space<smem>>
    %131 = vector.extract_strided_slice %115 {offsets = [1, 0, 0], sizes = [1, 4, 4], strides = [1, 1, 1]} : vector<4x4x4xf32> to vector<1x4x4xf32>
    %132 = vector.shape_cast %131 : vector<1x4x4xf32> to vector<4x4xf32>
    %133 = vector.broadcast %130 : f32 to vector<4x4xf32>
    %134 = arith.mulf %133, %132 : vector<4x4xf32>
    %135 = arith.addf %129, %134 : vector<4x4xf32>
    %c10 = arith.constant 10 : index
    %136 = memref.load %arg8[%c10] : memref<24xf32, #tpu.memory_space<smem>>
    %137 = vector.extract_strided_slice %115 {offsets = [2, 0, 0], sizes = [1, 4, 4], strides = [1, 1, 1]} : vector<4x4x4xf32> to vector<1x4x4xf32>
    %138 = vector.shape_cast %137 : vector<1x4x4xf32> to vector<4x4xf32>
    %139 = vector.broadcast %136 : f32 to vector<4x4xf32>
    %140 = arith.mulf %139, %138 : vector<4x4xf32>
    %141 = arith.addf %135, %140 : vector<4x4xf32>
    %c11 = arith.constant 11 : index
    %142 = memref.load %arg8[%c11] : memref<24xf32, #tpu.memory_space<smem>>
    %143 = vector.extract_strided_slice %115 {offsets = [3, 0, 0], sizes = [1, 4, 4], strides = [1, 1, 1]} : vector<4x4x4xf32> to vector<1x4x4xf32>
    %144 = vector.shape_cast %143 : vector<1x4x4xf32> to vector<4x4xf32>
    %145 = vector.broadcast %142 : f32 to vector<4x4xf32>
    %146 = arith.mulf %145, %144 : vector<4x4xf32>
    %147 = arith.addf %141, %146 : vector<4x4xf32>
    %148 = arith.negf %147 : vector<4x4xf32>
    %149 = math.exp %148 : vector<4x4xf32>
    %cst_22 = arith.constant 1.000000e+00 : f32
    %150 = vector.broadcast %cst_22 : f32 to vector<4x4xf32>
    %151 = arith.addf %150, %149 : vector<4x4xf32>
    %152 = arith.divf %150, %151 : vector<4x4xf32>
    %c12 = arith.constant 12 : index
    %153 = memref.load %arg8[%c12] : memref<24xf32, #tpu.memory_space<smem>>
    %154 = vector.extract_strided_slice %115 {offsets = [0, 0, 0], sizes = [1, 4, 4], strides = [1, 1, 1]} : vector<4x4x4xf32> to vector<1x4x4xf32>
    %155 = vector.shape_cast %154 : vector<1x4x4xf32> to vector<4x4xf32>
    %156 = vector.broadcast %153 : f32 to vector<4x4xf32>
    %157 = arith.mulf %156, %155 : vector<4x4xf32>
    %c13 = arith.constant 13 : index
    %158 = memref.load %arg8[%c13] : memref<24xf32, #tpu.memory_space<smem>>
    %159 = vector.extract_strided_slice %115 {offsets = [1, 0, 0], sizes = [1, 4, 4], strides = [1, 1, 1]} : vector<4x4x4xf32> to vector<1x4x4xf32>
    %160 = vector.shape_cast %159 : vector<1x4x4xf32> to vector<4x4xf32>
    %161 = vector.broadcast %158 : f32 to vector<4x4xf32>
    %162 = arith.mulf %161, %160 : vector<4x4xf32>
    %163 = arith.addf %157, %162 : vector<4x4xf32>
    %c14 = arith.constant 14 : index
    %164 = memref.load %arg8[%c14] : memref<24xf32, #tpu.memory_space<smem>>
    %165 = vector.extract_strided_slice %115 {offsets = [2, 0, 0], sizes = [1, 4, 4], strides = [1, 1, 1]} : vector<4x4x4xf32> to vector<1x4x4xf32>
    %166 = vector.shape_cast %165 : vector<1x4x4xf32> to vector<4x4xf32>
    %167 = vector.broadcast %164 : f32 to vector<4x4xf32>
    %168 = arith.mulf %167, %166 : vector<4x4xf32>
    %169 = arith.addf %163, %168 : vector<4x4xf32>
    %c15 = arith.constant 15 : index
    %170 = memref.load %arg8[%c15] : memref<24xf32, #tpu.memory_space<smem>>
    %171 = vector.extract_strided_slice %115 {offsets = [3, 0, 0], sizes = [1, 4, 4], strides = [1, 1, 1]} : vector<4x4x4xf32> to vector<1x4x4xf32>
    %172 = vector.shape_cast %171 : vector<1x4x4xf32> to vector<4x4xf32>
    %173 = vector.broadcast %170 : f32 to vector<4x4xf32>
    %174 = arith.mulf %173, %172 : vector<4x4xf32>
    %175 = arith.addf %169, %174 : vector<4x4xf32>
    %176 = arith.negf %175 : vector<4x4xf32>
    %177 = math.exp %176 : vector<4x4xf32>
    %cst_23 = arith.constant 1.000000e+00 : f32
    %178 = vector.broadcast %cst_23 : f32 to vector<4x4xf32>
    %179 = arith.addf %178, %177 : vector<4x4xf32>
    %180 = arith.divf %178, %179 : vector<4x4xf32>
    %181 = arith.addf %152, %180 : vector<4x4xf32>
    %182 = arith.mulf %181, %124 : vector<4x4xf32>
    %183 = vector.shape_cast %182 : vector<4x4xf32> to vector<1x4x4xf32>
    %cst_24 = arith.constant dense<0.000000e+00> : vector<1xf32>
    %184 = vector.multi_reduction <add>, %183, %cst_24 [1, 2] : vector<1x4x4xf32> to vector<1xf32>
    %185 = vector.shape_cast %184 : vector<1xf32> to vector<1x1x1xf32>
    %186 = vector.extract %185[0, 0, 0] : f32 from vector<1x1x1xf32>
    %cst_25 = arith.constant 0.00130208337 : f32
    %187 = arith.mulf %186, %cst_25 : f32
    %188 = arith.addf %94, %187 : f32
    %189 = vector.extract_strided_slice %104 {offsets = [0, 0, 0], sizes = [8, 4, 4], strides = [1, 1, 1]} : vector<8x8x8xf32> to vector<8x4x4xf32>
    %c0_26 = arith.constant 0 : index
    %c0_27 = arith.constant 0 : index
    %190 = vector.load %arg6[%c0_26, %c0_27] : memref<4x4xf32, #tpu.memory_space<vmem>>, vector<4x4xf32>
    %c0_28 = arith.constant 0 : index
    %c0_29 = arith.constant 0 : index
    %191 = vector.load %arg7[%c0_28, %c0_29] : memref<4x4xf32, #tpu.memory_space<vmem>>, vector<4x4xf32>
    %192 = vector.shape_cast %191 : vector<4x4xf32> to vector<1x4x4xf32>
    %193 = vector.shape_cast %192 : vector<1x4x4xf32> to vector<1x4x4xf32>
    %194 = vector.broadcast %193 : vector<1x4x4xf32> to vector<8x4x4xf32>
    %cst_30 = arith.constant dense<0.000000e+00> : vector<8x4x4xf32>
    %195 = tpu.matmul %189, %194, %cst_30 {dimension_numbers = #tpu.dot_dimension_numbers<[2], [1], [1], [2], [0, 0, 0, 1, 1, 2], [0], [0]>} : vector<8x4x4xf32>, vector<8x4x4xf32>, vector<8x4x4xf32> -> vector<8x4x4xf32>
    %196 = vector.shape_cast %190 : vector<4x4xf32> to vector<1x4x4xf32>
    %197 = vector.shape_cast %196 : vector<1x4x4xf32> to vector<1x4x4xf32>
    %198 = vector.broadcast %197 : vector<1x4x4xf32> to vector<8x4x4xf32>
    %cst_31 = arith.constant dense<0.000000e+00> : vector<8x4x4xf32>
    %199 = tpu.matmul %198, %195, %cst_31 {dimension_numbers = #tpu.dot_dimension_numbers<[2], [1], [1], [2], [0, 0, 0, 1, 1, 2], [0], [0]>} : vector<8x4x4xf32>, vector<8x4x4xf32>, vector<8x4x4xf32> -> vector<8x4x4xf32>
    %200 = vector.extract_strided_slice %199 {offsets = [0, 2, 0], sizes = [8, 2, 2], strides = [1, 1, 1]} : vector<8x4x4xf32> to vector<8x2x2xf32>
    %201 = vector.extract_strided_slice %199 {offsets = [0, 0, 2], sizes = [8, 2, 2], strides = [1, 1, 1]} : vector<8x4x4xf32> to vector<8x2x2xf32>
    %202 = vector.extract_strided_slice %199 {offsets = [0, 2, 2], sizes = [8, 2, 2], strides = [1, 1, 1]} : vector<8x4x4xf32> to vector<8x2x2xf32>
    %203 = vector.extract_strided_slice %200 {offsets = [0, 0, 0], sizes = [4, 2, 2], strides = [1, 1, 1]} : vector<8x2x2xf32> to vector<4x2x2xf32>
    %204 = vector.extract_strided_slice %200 {offsets = [4, 0, 0], sizes = [4, 2, 2], strides = [1, 1, 1]} : vector<8x2x2xf32> to vector<4x2x2xf32>
    %205 = vector.extract_strided_slice %201 {offsets = [0, 0, 0], sizes = [4, 2, 2], strides = [1, 1, 1]} : vector<8x2x2xf32> to vector<4x2x2xf32>
    %206 = vector.extract_strided_slice %201 {offsets = [4, 0, 0], sizes = [4, 2, 2], strides = [1, 1, 1]} : vector<8x2x2xf32> to vector<4x2x2xf32>
    %207 = vector.extract_strided_slice %202 {offsets = [0, 0, 0], sizes = [4, 2, 2], strides = [1, 1, 1]} : vector<8x2x2xf32> to vector<4x2x2xf32>
    %208 = vector.extract_strided_slice %202 {offsets = [4, 0, 0], sizes = [4, 2, 2], strides = [1, 1, 1]} : vector<8x2x2xf32> to vector<4x2x2xf32>
    %209 = arith.addf %203, %205 : vector<4x2x2xf32>
    %210 = arith.addf %209, %207 : vector<4x2x2xf32>
    %211 = arith.subf %204, %203 : vector<4x2x2xf32>
    %212 = math.absf %211 : vector<4x2x2xf32>
    %213 = arith.subf %206, %205 : vector<4x2x2xf32>
    %214 = math.absf %213 : vector<4x2x2xf32>
    %215 = arith.addf %212, %214 : vector<4x2x2xf32>
    %216 = arith.subf %208, %207 : vector<4x2x2xf32>
    %217 = math.absf %216 : vector<4x2x2xf32>
    %218 = arith.addf %215, %217 : vector<4x2x2xf32>
    %cst_32 = arith.constant dense<0.000000e+00> : vector<2x2xf32>
    %219 = vector.multi_reduction <add>, %218, %cst_32 [0] : vector<4x2x2xf32> to vector<2x2xf32>
    %c16 = arith.constant 16 : index
    %220 = memref.load %arg8[%c16] : memref<24xf32, #tpu.memory_space<smem>>
    %221 = vector.extract_strided_slice %210 {offsets = [0, 0, 0], sizes = [1, 2, 2], strides = [1, 1, 1]} : vector<4x2x2xf32> to vector<1x2x2xf32>
    %222 = vector.shape_cast %221 : vector<1x2x2xf32> to vector<2x2xf32>
    %223 = vector.broadcast %220 : f32 to vector<2x2xf32>
    %224 = arith.mulf %223, %222 : vector<2x2xf32>
    %c17 = arith.constant 17 : index
    %225 = memref.load %arg8[%c17] : memref<24xf32, #tpu.memory_space<smem>>
    %226 = vector.extract_strided_slice %210 {offsets = [1, 0, 0], sizes = [1, 2, 2], strides = [1, 1, 1]} : vector<4x2x2xf32> to vector<1x2x2xf32>
    %227 = vector.shape_cast %226 : vector<1x2x2xf32> to vector<2x2xf32>
    %228 = vector.broadcast %225 : f32 to vector<2x2xf32>
    %229 = arith.mulf %228, %227 : vector<2x2xf32>
    %230 = arith.addf %224, %229 : vector<2x2xf32>
    %c18 = arith.constant 18 : index
    %231 = memref.load %arg8[%c18] : memref<24xf32, #tpu.memory_space<smem>>
    %232 = vector.extract_strided_slice %210 {offsets = [2, 0, 0], sizes = [1, 2, 2], strides = [1, 1, 1]} : vector<4x2x2xf32> to vector<1x2x2xf32>
    %233 = vector.shape_cast %232 : vector<1x2x2xf32> to vector<2x2xf32>
    %234 = vector.broadcast %231 : f32 to vector<2x2xf32>
    %235 = arith.mulf %234, %233 : vector<2x2xf32>
    %236 = arith.addf %230, %235 : vector<2x2xf32>
    %c19 = arith.constant 19 : index
    %237 = memref.load %arg8[%c19] : memref<24xf32, #tpu.memory_space<smem>>
    %238 = vector.extract_strided_slice %210 {offsets = [3, 0, 0], sizes = [1, 2, 2], strides = [1, 1, 1]} : vector<4x2x2xf32> to vector<1x2x2xf32>
    %239 = vector.shape_cast %238 : vector<1x2x2xf32> to vector<2x2xf32>
    %240 = vector.broadcast %237 : f32 to vector<2x2xf32>
    %241 = arith.mulf %240, %239 : vector<2x2xf32>
    %242 = arith.addf %236, %241 : vector<2x2xf32>
    %243 = arith.negf %242 : vector<2x2xf32>
    %244 = math.exp %243 : vector<2x2xf32>
    %cst_33 = arith.constant 1.000000e+00 : f32
    %245 = vector.broadcast %cst_33 : f32 to vector<2x2xf32>
    %246 = arith.addf %245, %244 : vector<2x2xf32>
    %247 = arith.divf %245, %246 : vector<2x2xf32>
    %c20 = arith.constant 20 : index
    %248 = memref.load %arg8[%c20] : memref<24xf32, #tpu.memory_space<smem>>
    %249 = vector.extract_strided_slice %210 {offsets = [0, 0, 0], sizes = [1, 2, 2], strides = [1, 1, 1]} : vector<4x2x2xf32> to vector<1x2x2xf32>
    %250 = vector.shape_cast %249 : vector<1x2x2xf32> to vector<2x2xf32>
    %251 = vector.broadcast %248 : f32 to vector<2x2xf32>
    %252 = arith.mulf %251, %250 : vector<2x2xf32>
    %c21 = arith.constant 21 : index
    %253 = memref.load %arg8[%c21] : memref<24xf32, #tpu.memory_space<smem>>
    %254 = vector.extract_strided_slice %210 {offsets = [1, 0, 0], sizes = [1, 2, 2], strides = [1, 1, 1]} : vector<4x2x2xf32> to vector<1x2x2xf32>
    %255 = vector.shape_cast %254 : vector<1x2x2xf32> to vector<2x2xf32>
    %256 = vector.broadcast %253 : f32 to vector<2x2xf32>
    %257 = arith.mulf %256, %255 : vector<2x2xf32>
    %258 = arith.addf %252, %257 : vector<2x2xf32>
    %c22 = arith.constant 22 : index
    %259 = memref.load %arg8[%c22] : memref<24xf32, #tpu.memory_space<smem>>
    %260 = vector.extract_strided_slice %210 {offsets = [2, 0, 0], sizes = [1, 2, 2], strides = [1, 1, 1]} : vector<4x2x2xf32> to vector<1x2x2xf32>
    %261 = vector.shape_cast %260 : vector<1x2x2xf32> to vector<2x2xf32>
    %262 = vector.broadcast %259 : f32 to vector<2x2xf32>
    %263 = arith.mulf %262, %261 : vector<2x2xf32>
    %264 = arith.addf %258, %263 : vector<2x2xf32>
    %c23 = arith.constant 23 : index
    %265 = memref.load %arg8[%c23] : memref<24xf32, #tpu.memory_space<smem>>
    %266 = vector.extract_strided_slice %210 {offsets = [3, 0, 0], sizes = [1, 2, 2], strides = [1, 1, 1]} : vector<4x2x2xf32> to vector<1x2x2xf32>
    %267 = vector.shape_cast %266 : vector<1x2x2xf32> to vector<2x2xf32>
    %268 = vector.broadcast %265 : f32 to vector<2x2xf32>
    %269 = arith.mulf %268, %267 : vector<2x2xf32>
    %270 = arith.addf %264, %269 : vector<2x2xf32>
    %271 = arith.negf %270 : vector<2x2xf32>
    %272 = math.exp %271 : vector<2x2xf32>
    %cst_34 = arith.constant 1.000000e+00 : f32
    %273 = vector.broadcast %cst_34 : f32 to vector<2x2xf32>
    %274 = arith.addf %273, %272 : vector<2x2xf32>
    %275 = arith.divf %273, %274 : vector<2x2xf32>
    %276 = arith.addf %247, %275 : vector<2x2xf32>
    %277 = arith.mulf %276, %219 : vector<2x2xf32>
    %278 = vector.shape_cast %277 : vector<2x2xf32> to vector<1x2x2xf32>
    %cst_35 = arith.constant dense<0.000000e+00> : vector<1xf32>
    %279 = vector.multi_reduction <add>, %278, %cst_35 [1, 2] : vector<1x2x2xf32> to vector<1xf32>
    %280 = vector.shape_cast %279 : vector<1xf32> to vector<1x1x1xf32>
    %281 = vector.extract %280[0, 0, 0] : f32 from vector<1x1x1xf32>
    %cst_36 = arith.constant 0.00520833349 : f32
    %282 = arith.mulf %281, %cst_36 : f32
    %283 = arith.addf %188, %282 : f32
    %cst_37 = arith.constant 1.000000e+00 : f32
    %284 = vector.broadcast %cst_37 : f32 to vector<1x1x1xf32>
    %285 = vector.broadcast %283 : f32 to vector<1x1x1xf32>
    %286 = arith.mulf %285, %284 : vector<1x1x1xf32>
    %c0_38 = arith.constant 0 : index
    %c0_39 = arith.constant 0 : index
    %c0_40 = arith.constant 0 : index
    %287 = vector.load %arg9[%c0_38, %c0_39, %c0_40] : memref<1x1x1xf32, #tpu.memory_space<vmem>>, vector<1x1x1xf32>
    tpu.vector_store %arg9[%c0_38, %c0_39, %c0_40], %286 {strides = array<i32>} : memref<1x1x1xf32, #tpu.memory_space<vmem>>, vector<1x1x1xf32>,
    return
  }
  func.func @transform_0(%arg0: i32) -> (i32, i32, i32, i32) {
    %c0_i32 = arith.constant 0 : i32
    %c0_i32_0 = arith.constant 0 : i32
    %c0_i32_1 = arith.constant 0 : i32
    %c0_i32_2 = arith.constant 0 : i32
    return %arg0, %c0_i32, %c0_i32_0, %c0_i32_1 : i32, i32, i32, i32
  }
  func.func @transform_1(%arg0: i32) -> (i32, i32) {
    %c0_i32 = arith.constant 0 : i32
    %c0_i32_0 = arith.constant 0 : i32
    %c0_i32_1 = arith.constant 0 : i32
    return %c0_i32, %c0_i32_0 : i32, i32
  }
  func.func @transform_2(%arg0: i32) -> (i32, i32) {
    %c0_i32 = arith.constant 0 : i32
    %c0_i32_0 = arith.constant 0 : i32
    %c0_i32_1 = arith.constant 0 : i32
    return %c0_i32, %c0_i32_0 : i32, i32
  }
  func.func @transform_3(%arg0: i32) -> (i32, i32) {
    %c0_i32 = arith.constant 0 : i32
    %c0_i32_0 = arith.constant 0 : i32
    %c0_i32_1 = arith.constant 0 : i32
    return %c0_i32, %c0_i32_0 : i32, i32
  }
  func.func @transform_4(%arg0: i32) -> (i32, i32) {
    %c0_i32 = arith.constant 0 : i32
    %c0_i32_0 = arith.constant 0 : i32
    %c0_i32_1 = arith.constant 0 : i32
    return %c0_i32, %c0_i32_0 : i32, i32
  }
  func.func @transform_5(%arg0: i32) -> (i32, i32) {
    %c0_i32 = arith.constant 0 : i32
    %c0_i32_0 = arith.constant 0 : i32
    %c0_i32_1 = arith.constant 0 : i32
    return %c0_i32, %c0_i32_0 : i32, i32
  }
  func.func @transform_6(%arg0: i32) -> (i32, i32) {
    %c0_i32 = arith.constant 0 : i32
    %c0_i32_0 = arith.constant 0 : i32
    %c0_i32_1 = arith.constant 0 : i32
    return %c0_i32, %c0_i32_0 : i32, i32
  }
  func.func @transform_7(%arg0: i32) -> i32 {
    %c0_i32 = arith.constant 0 : i32
    %c0_i32_0 = arith.constant 0 : i32
    return %c0_i32 : i32
  }
  func.func @transform_8(%arg0: i32) -> (i32, i32, i32) {
    %c0_i32 = arith.constant 0 : i32
    %c0_i32_0 = arith.constant 0 : i32
    %c0_i32_1 = arith.constant 0 : i32
    return %arg0, %c0_i32, %c0_i32_0 : i32, i32, i32
  }
}

</mosaic_0001>

<bundles_post_ra>
// kernel: tpu_custom_call.1
= control target key start
LH: loop header
LB: loop body
LE: loop exit
PB: predicated region body
PF: predicated region fallthrough
CT: control target
= control target key end

     0   :  { %13 = vsyncpa [#allocation3], 0  ;;  %s3142_s0 = inlined_call_operand.hbm [shape: f32[2,8,16,16], index: 0, kind: input, shape index: {}]   ;;  %s3143_s1 = inlined_call_operand.hbm [shape: f32[16,16], index: 1, kind: input, shape index: {}]   ;;  %s3144_s2 = inlined_call_operand.hbm [shape: f32[16,16], index: 2, kind: input, shape index: {}]   ;;  %s3145_s3 = inlined_call_operand.hbm [shape: f32[8,8], index: 3, kind: input, shape index: {}]   ;;  %s3146_s4 = inlined_call_operand.hbm [shape: f32[8,8], index: 4, kind: input, shape index: {}]   ;;  %s3147_s5 = inlined_call_operand.vmem [shape: f32[4,4], index: 5, kind: input, shape index: {}]   ;;  %s3148_s6 = inlined_call_operand.hbm [shape: f32[4,4], index: 6, kind: input, shape index: {}]   ;;  %s3149_s7 = inlined_call_operand.vmem [shape: f32[24], index: 7, kind: input, shape index: {}]   ;;  %s3150_s8 = inlined_call_operand.vmem [shape: f32[2,1,1], index: 8, kind: output, shape index: {}]  }
   0x1   :  { %15 = vsyncpa [#allocation3 + $0x1], 0 }
   0x2   :  { %16 = vsyncpa [#allocation6], 0 }
   0x3   :  { %17 = vsyncpa [#allocation9], 0 }
   0x4   :  { %18 = vsyncpa [#allocation12], 0 }
   0x5   :  { %19 = vsyncpa [#allocation4], 0  ;;  %s2581_s27 = smov 0   ;;  %s2583_s28 = smov 0  }
   0x6   :  { %s2585_s29 = smov 0   ;;  %s2587_s30 = smov 0  }
   0x7 LB: > { %s240_s11 = sshll.u32 %s3143_s1, 4  ;;  %s2605_s12 = sadd.s32 4294967295, %s2523_s30   ;;  %s2523_s30 = sphi %s2587_s30, %s3166_s30   ;;  %s2519_s29 = sphi %s2585_s29, %s3165_s29   ;;  %s2515_s28 = sphi %s2583_s28, %s3164_s28   ;;  %s2511_s27 = sphi %s2581_s27, %s3163_s27   ;;  %s241_s11 = int_to_ptr.hbm [resolvable:$true] %s240_s11 }
   0x8   : > { %p2012_p0 = scmp.ge.s32.totalorder %s2523_s30, 1  ;;  %p46_p1 = scmp.eq.s32.totalorder %s2605_s12, 0 }
   0x9   : > { %p229_p2 = scmp.lt.s32.totalorder %s2523_s30, 3  ;;  %s2525_s14 = smov [#allocation5]  }
   0xa   : > { %s242_s15 = sshll.u32 %s2525_s14, 4  ;;  %s269_s18 = sshll.u32 %s3145_s3, 4  ;;  %s243_s15 = int_to_ptr.vmem [resolvable:$true] %s242_s15  ;;  %s270_s18 = int_to_ptr.hbm [resolvable:$true] %s269_s18 }
   0xb   : > { %p2610_p3 = pnand %p2012_p0, %p229_p2  ;;  %s254_s22 = sshll.u32 %s3144_s2, 4  ;;  %s255_s22 = int_to_ptr.hbm [resolvable:$true] %s254_s22 }
   0xc   : > { %s2526_s23 = smov [#allocation8]   ;;  %s2527_s25 = smov 128  }
   0xd   : > { %p2175_p4 = pneg %p2610_p3  ;;  %s271_s24 = sshll.u32 %s2526_s23, 4  ;;  %s272_s24 = int_to_ptr.vmem [resolvable:$true] %s271_s24 }
   0xe   : > { %s2528_s26 = smov 8   ;;  %s281_s14 = sshll.u32 %s3146_s4, 4  ;;  %s282_s14 = int_to_ptr.hbm [resolvable:$true] %s281_s14 }
   0xf   : > { %p2621_p5 = pnand %p2175_p4, %p46_p1  ;;  %s2529_s16 = smov [#allocation7]  }
  0x10   : > { %s256_s17 = sshll.u32 %s2529_s16, 4  ;;  %s296_s21 = sshll.u32 %s3148_s6, 4  ;;  %s257_s17 = int_to_ptr.vmem [resolvable:$true] %s256_s17  ;;  %s297_s21 = int_to_ptr.hbm [resolvable:$true] %s296_s21 }
  0x11   : > { %2178 = dma.hbm_to_vmem [thread:$0]  (!%p2621_p5), %s241_s11, 256, %s243_s15, [#allocation6], %s2527_s25, %s2527_s25, %s2528_s26  }
  0x12   : > { %2184 = dma.hbm_to_vmem [thread:$0]  (!%p2621_p5), %s270_s18, 128, %s272_s24, [#allocation9]  }
  0x13   : > { %2181 = dma.hbm_to_vmem [thread:$0]  (!%p2621_p5), %s255_s22, 256, %s257_s17, [#allocation6], %s2527_s25, %s2527_s25, %s2528_s26  }
  0x14   : > { %s2530_s11 = smov [#allocation10]   ;;  %s308_s22 = sshll.u32 %s3149_s7, 4  ;;  %s309_s22 = int_to_ptr.vmem [resolvable:$true] %s308_s22 }
  0x15   : > { %s283_s15 = sshll.u32 %s2530_s11, 4  ;;  %s2531_s9 = smov [#allocation11]   ;;  %s284_s15 = int_to_ptr.vmem [resolvable:$true] %s283_s15 }
  0x16   : > { %2187 = dma.hbm_to_vmem [thread:$0]  (!%p2621_p5), %s282_s14, 128, %s284_s15, [#allocation9]  }
  0x17   : > { %s298_s10 = sshll.u32 %s2531_s9, 4  ;;  %s2532_s16 = smov [#allocation13]   ;;  %s299_s10 = int_to_ptr.vmem [resolvable:$true] %s298_s10 }
  0x18   : > { %2190 = dma.hbm_to_vmem [thread:$0]  (!%p2621_p5), %s297_s21, 64, %s299_s10, [#allocation12]  }
  0x19   : > { %2193 = dma.vmem_to_smem (!%p2621_p5), %s309_s22, 16, %s2532_s16, [#allocation4]  }
  0x1a   : > { %s2656_s17 = sadd.s32 1, %s2523_s30   ;;  %s32_s11 = sadd.s32 1, %s2519_s29 }
  0x1b   : > { %s29_s14 = ssub.s32 %s2523_s30, %s2656_s17  ;;  %p39_p7 = scmp.ne.s32.totalorder %s2519_s29, %s2515_s28 }
  0x1c   : > { %p30_p6 = scmp.eq.s32.totalorder %s29_s14, 0  ;;  %p40_p8 = scmp.eq.s32.totalorder %s2523_s30, 0 }
  0x1d   : > { %p45_p9 = scmp.ne.s32.totalorder %s2515_s28, %s2511_s27  ;;  %p2204_p11 = scmp.lt.s32.totalorder %s2523_s30, 2 }
  0x1e   : > { %s2667_s15 = scalar_select %p30_p6, %s2519_s29, %s32_s11  }
  0x1f   : > { %p2671_p10 = por %p46_p1, %p45_p9  ;;  %s319_s20 = sand.u32 1, %s2519_s29  }
  0x20   : > { %s2142_s19 = sshll.u32 %s2523_s30, 7  ;;  %p41_p12 = por %p40_p8, %p39_p7 }
  0x21   : > { %s2020_s21 = sshll.u32 %s319_s20, 7  ;;  %s328_s22 = scalar_lea.hbm %s3142_s0, %s2142_s19 }
  0x22   : > { %s329_s9 = sshll.u32 %s328_s22, 4  ;;  %s323_s10 = scalar_lea.vmem [#allocation2], %s2020_s21  ;;  %s330_s9 = int_to_ptr.hbm [resolvable:$true] %s329_s9 }
  0x23   : > { %s331_s16 = sshll.u32 %s323_s10, 4  ;;  %p2681_p13 = pnand %p2204_p11, %p41_p12  ;;  %s332_s16 = int_to_ptr.vmem [resolvable:$true] %s331_s16 }
  0x24   : > { %s320_s14 = scalar_lea.sflag [#allocation3], %s319_s20  ;;  %s2443_s11 = sshra.s32 %s330_s9, 4  ;;  %s2444_s11 = int_to_ptr.hbm [resolvable:$true] %s2443_s11 }
  0x25   : > { %s2445_s30 = scalar_lea.hbm %s2444_s11, 128  ;;  %p2447_p2 = pneg %p2681_p13 }
  0x26   : > { %p2446_p0 = scmp.ne.s32.totalorder %s2444_s11, %s2445_s30  ;;  %s2450_s21 = scalar_lea.hbm %s3142_s0, 256 }
  0x27   : > { %p2451_p6 = scmp.lt.s32.totalorder %s2444_s11, %s3142_s0  ;;  %p2452_p7 = scmp.lt.s32.totalorder %s2450_s21, %s2445_s30 }
  0x28   : > { %p2448_p4 = pnand %p2447_p2, %p2446_p0 }
  0x29   : > { %p2453_p8 = por %p2452_p7, %p2451_p6 }
  0x2a   : > { %p2449_p5 = pneg %p2448_p4 }
  0x2c   : > { %p2454_p9 = pnand %p2453_p8, %p2449_p5 }
  0x2e   : > { %2457 = shalt.err (!%p2454_p9)
}
  0x2f   : > { %2197 = dma.hbm_to_vmem [thread:$0]  (!%p2681_p13), %s330_s9, 2048, %s332_s16, %s320_s14, %s2527_s25, %s2527_s25, %s2528_s26  }
  0x30   : > { %343 = sbr.rel (%p2610_p3) target bundleno = 1272 (0x4f8), region = 52  ;;  %s345_s20 = sand.u32 (!%p2610_p3), 1, %s2515_s28  }
  0x31   : > { %s2024_s10 = sshll.u32 (!%p2610_p3), %s345_s20, 7  ;;  %s346_s19 = scalar_lea.sflag (!%p2610_p3), [#allocation3], %s345_s20 }
  0x32   : > { %s2701_s23 = scalar_lea.vmem (!%p2610_p3), [#allocation2], %s2024_s10 }
  0x35   : > { %2490 = dma.done.wait (%p2671_p10), %s346_s19, 2048  }
  0x36   : > { %2492 = vsyncadd (%p2671_p10), %s346_s19, 4294965248 }
  0x37   : > { %2494 = dma.done.wait (%p46_p1), [#allocation6], 512  }
  0x38   : > { %2496 = vsyncadd (%p46_p1), [#allocation6], 4294966784 }
  0x39   : > { %2498 = dma.done.wait (%p46_p1), [#allocation9], 256  }
  0x3a   : > { %2500 = vsyncadd (%p46_p1), [#allocation9], 4294967040 }
  0x3b   : > { %2502 = dma.done.wait (%p46_p1), [#allocation12], 64  }
  0x3c   : > { %2504 = vsyncadd (%p46_p1), [#allocation12], 4294967232 }
  0x3d   : > { %2506 = dma.done.wait (%p46_p1), [#allocation4], 16  }
  0x3e   : > { %2508 = vsyncadd (%p46_p1), [#allocation4], 4294967280 }
  0x3f   : > { %385 = sfence }
  0x40   : > { %v434_v0 = vld [vmem:[#allocation7 + $0x8] sm:$0xff]  ;;  %v433_v1 = vld [vmem:[#allocation7] sm:$0xff]  ;;  %v415_v2 = vld [vmem:[%s2701_s23] sm:$0xff]  ;;  %vm435_vm0 = vcmask 130048   ;;  %vm835_vm1 = vcmask 64512   ;;  %s2533_s13 = smov 120  }
  0x41   : > { %498 = vmatpush.msra.mxu0 %v434_v0  ;;  %v416_v3 = vld [vmem:[%s2701_s23 + $0x8] sm:$0xff]  ;;  %v417_v4 = vld [vmem:[%s2701_s23 + $0x10] sm:$0xff]  ;;  %v418_v5 = vld [vmem:[%s2701_s23 + $0x18] sm:$0xff]  ;;  %s843_s25 = sld [smem:[#allocation13]]  ;;  %vm1338_vm10 = vcmask 1043456   ;;  %vm1335_vm11 = vcmask 31744  }
  0x42   : > { %v419_v6 = vld [vmem:[%s2701_s23 + $0x20] sm:$0xff]  ;;  %v420_v7 = vld [vmem:[%s2701_s23 + $0x28] sm:$0xff]  ;;  %v421_v8 = vld [vmem:[%s2701_s23 + $0x30] sm:$0xff]  ;;  %s2067_s26 = sld [smem:[#allocation13 + $0x4]]  ;;  %s2534_s30 = smov 124   ;;  %vm1239_vm14 = vcmask 31748  }
  0x43   : > { %499 = vmatpush.msra.mxu0 %v433_v1  ;;  %v422_v9 = vld [vmem:[%s2701_s23 + $0x38] sm:$0xff]  ;;  %v423_v10 = vld [vmem:[%s2701_s23 + $0x40] sm:$0xff]  ;;  %v424_v11 = vld [vmem:[%s2701_s23 + $0x48] sm:$0xff]  ;;  %s2063_s18 = sld [smem:[#allocation13 + $0x1]]  ;;  %s2535_s22 = smov 126  }
  0x44   : > { %2031 = vmatmul.msk.f32.vlgmr.msra.gmra.mxu0 %vm435_vm0, %v415_v2  ;;  %v425_v12 = vld [vmem:[%s2701_s23 + $0x50] sm:$0xff]  ;;  %v426_v13 = vld [vmem:[%s2701_s23 + $0x58] sm:$0xff]  ;;  %v427_v14 = vld [vmem:[%s2701_s23 + $0x60] sm:$0xff]  ;;  %s2068_s9 = sld [smem:[#allocation13 + $0x5]]  ;;  %p412_p1 = scmp.lt.s32.totalorder %s2605_s12, 1 }
  0x45   : > { %v428_v15 = vld [vmem:[%s2701_s23 + $0x68] sm:$0xff]  ;;  %v429_v16 = vld [vmem:[%s2701_s23 + $0x70] sm:$0xff]  ;;  %v430_v17 = vld [vmem:[%s2701_s23 + $0x78] sm:$0xff]  ;;  %s2064_s16 = sld [smem:[#allocation13 + $0x2]] }
  0x46   : > { %v431_v20 = vld [vmem:[#allocation5] sm:$0xff]  ;;  %v432_v22 = vld [vmem:[#allocation5 + $0x8] sm:$0xff]  ;;  %s2069_s27 = sld [smem:[#allocation13 + $0x6]]  ;;  %s3168_s12 = smov (!%p412_p1, %s2605_s12), 1 }
  0x47   : > { %v926_v34 = vld [vmem:[#allocation10] sm:$0xff]  ;;  %v2811_v1 = vld [vmem:[#allocation8] sm:$0xff]  ;;  %s2065_s14 = sld [smem:[#allocation13 + $0x3]] }
  0x48   : > { %s2070_s11 = sld [smem:[#allocation13 + $0x7]] }
  0x49   : > { %s2978_s20 = sld [smem:[#allocation13 + $0x9]] }
  0x4a   : > { %s2982_s10 = sld [smem:[#allocation13 + $0xd]] }
  0x4b   : > { %s2984_s19 = sld [smem:[#allocation13 + $0x8]] }
  0x4c   : > { %2032 = vmatmul.msk.f32.gmra.mxu0 %vm435_vm0, %v416_v3  ;;  %s2989_s23 = sld [smem:[#allocation13 + $0xc]] }
  0x4d   : > { %s3078_s21 = sld [smem:[#allocation13 + $0x13]] }
  0x4e   : > { %s3080_s24 = sld [smem:[#allocation13 + $0x17]] }
  0x54   : > { %2033 = vmatmul.msk.f32.gmra.mxu0 %vm435_vm0, %v417_v4 }
  0x5c   : > { %2034 = vmatmul.msk.f32.gmra.mxu0 %vm435_vm0, %v418_v5  ;;  %v844_v5 = vstv %s843_s25  ;;  %s2994_s25 = sld [smem:[#allocation13 + $0xa]] }
  0x64   : > { %2035 = vmatmul.msk.f32.gmra.mxu0 %vm435_vm0, %v419_v6  ;;  %v878_v6 = vstv %s2067_s26  ;;  %s2998_s26 = sld [smem:[#allocation13 + $0xe]] }
  0x6c   : > { %2036 = vmatmul.msk.f32.gmra.mxu0 %vm435_vm0, %v420_v7 }
  0x74   : > { %2037 = vmatmul.msk.f32.gmra.mxu0 %vm435_vm0, %v421_v8  ;;  %v847_v8 = vstv %s2063_s18  ;;  %s3000_s18 = sld [smem:[#allocation13 + $0xb]] }
  0x7c   : > { %2038 = vmatmul.msk.f32.gmra.mxu0 %vm435_vm0, %v422_v9  ;;  %v881_v9 = vstv %s2068_s9  ;;  %s3002_s9 = sld [smem:[#allocation13 + $0xf]] }
  0x84   : > { %2039 = vmatmul.msk.f32.gmra.mxu0 %vm435_vm0, %v423_v10 }
  0x8c   : > { %2040 = vmatmul.msk.f32.gmra.mxu0 %vm435_vm0, %v424_v11 }
  0x94   : > { %2041 = vmatmul.msk.f32.gmra.mxu0 %vm435_vm0, %v425_v12 }
  0x9c   : > { %2042 = vmatmul.msk.f32.gmra.mxu0 %vm435_vm0, %v426_v13 }
  0xa4   : > { %2043 = vmatmul.msk.f32.gmra.mxu0 %vm435_vm0, %v427_v14 }
  0xac   : > { %2044 = vmatmul.msk.f32.gmra.mxu0 %vm435_vm0, %v428_v15 }
  0xb4   : > { %2045 = vmatmul.msk.f32.gmra.mxu0 %vm435_vm0, %v429_v16 }
  0xbc   : > { %2046 = vmatmul.msk.f32.gmra.mxu0 %vm435_vm0, %v430_v17 }
  0xc1   : > { %v501_v18 = vpop.f32.mrf.mxu0 }
  0xc9   : > { %v504_v19 = vpop.f32.mrf.mxu0 }
  0xca   : > { %569 = vmatpush.msra.mxu1 %v504_v19 }
  0xcc   : > { %570 = vmatpush.msra.mxu1 %v501_v18 }
  0xcd   : > { %2047 = vmatmul.msk.f32.vlgmr.msra.gmra.mxu1 %vm435_vm0, %v431_v20 }
  0xd1   : > { %v507_v21 = vpop.f32.mrf.mxu0 }
  0xd5   : > { %2048 = vmatmul.msk.f32.gmra.mxu1 %vm435_vm0, %v432_v22 }
  0xd9   : > { %v510_v23 = vpop.f32.mrf.mxu0 }
  0xda   : > { %592 = vmatpush.msra.mxu2 %v510_v23 }
  0xdc   : > { %593 = vmatpush.msra.mxu2 %v507_v21  ;;  %v885_v21 = vstv %s2069_s27  ;;  %s3051_s27 = sld [smem:[#allocation13 + $0x10]] }
  0xdd   : > { %2049 = vmatmul.msk.f32.vlgmr.msra.gmra.mxu2 %vm435_vm0, %v431_v20 }
  0xe1   : > { %v513_v24 = vpop.f32.mrf.mxu0 }
  0xe5   : > { %2050 = vmatmul.msk.f32.gmra.mxu2 %vm435_vm0, %v432_v22 }
  0xe9   : > { %v516_v25 = vpop.f32.mrf.mxu0 }
  0xea   : > { %615 = vmatpush.msra.mxu3 %v516_v25 }
  0xec   : > { %616 = vmatpush.msra.mxu3 %v513_v24 }
  0xed   : > { %2051 = vmatmul.msk.f32.vlgmr.msra.gmra.mxu3 %vm435_vm0, %v431_v20 }
  0xf1   : > { %v519_v26 = vpop.f32.mrf.mxu0 }
  0xf5   : > { %2052 = vmatmul.msk.f32.gmra.mxu3 %vm435_vm0, %v432_v22 }
  0xf9   : > { %v522_v27 = vpop.f32.mrf.mxu0 }
  0xfa   : > { %638 = vmatpush.msrb.mxu1 %v522_v27 }
  0xfc   : > { %639 = vmatpush.msrb.mxu1 %v519_v26 }
  0xfd   : > { %2053 = vmatmul.msk.f32.vlgmr.msrb.gmra.mxu1 %vm435_vm0, %v431_v20 }
 0x101   : > { %v525_v28 = vpop.f32.mrf.mxu0 }
 0x105   : > { %2054 = vmatmul.msk.f32.gmra.mxu1 %vm435_vm0, %v432_v22 }
 0x109   : > { %v528_v29 = vpop.f32.mrf.mxu0 }
 0x10a   : > { %661 = vmatpush.msrb.mxu2 %v528_v29 }
 0x10c   : > { %662 = vmatpush.msrb.mxu2 %v525_v28 }
 0x10d   : > { %2055 = vmatmul.msk.f32.vlgmr.msrb.gmra.mxu2 %vm435_vm0, %v431_v20 }
 0x111   : > { %v531_v30 = vpop.f32.mrf.mxu0 }
 0x115   : > { %2056 = vmatmul.msk.f32.gmra.mxu2 %vm435_vm0, %v432_v22 }
 0x119   : > { %v534_v31 = vpop.f32.mrf.mxu0 }
 0x11a   : > { %684 = vmatpush.msrb.mxu3 %v534_v31  ;;  %v855_v31 = vstv %s2065_s14  ;;  %s3059_s14 = sld [smem:[#allocation13 + $0x14]] }
 0x11c   : > { %685 = vmatpush.msrb.mxu3 %v531_v30 }
 0x11d   : > { %2057 = vmatmul.msk.f32.vlgmr.msrb.gmra.mxu3 %vm435_vm0, %v431_v20 }
 0x11e   : > { %962 = vmatpush.msra.mxu3 %v926_v34 }
 0x121   : > { %v537_v32 = vpop.f32.mrf.mxu0 }
 0x125   : > { %2058 = vmatmul.msk.f32.gmra.mxu3 %vm435_vm0, %v432_v22 }
 0x129   : > { %v540_v33 = vpop.f32.mrf.mxu0 }
 0x12a   : > { %707 = vmatpush.msra.mxu1 %v540_v33 }
 0x12c   : > { %708 = vmatpush.msra.mxu1 %v537_v32  ;;  %v889_v32 = vstv %s2070_s11  ;;  %s3066_s11 = sld [smem:[#allocation13 + $0x12]] }
 0x12d   : > { %2059 = vmatmul.msk.f32.vlgmr.msra.gmra.mxu1 %vm435_vm0, %v431_v20 }
 0x131   : > { %v543_v35 = vpop.f32.mrf.mxu0 }
 0x135   : > { %2060 = vmatmul.msk.f32.gmra.mxu1 %vm435_vm0, %v432_v22 }
 0x139   : > { %v546_v36 = vpop.f32.mrf.mxu0 }
 0x13a   : > { %730 = vmatpush.msra.mxu2 %v546_v36 }
 0x13c   : > { %731 = vmatpush.msra.mxu2 %v543_v35 }
 0x13d   : > { %2061 = vmatmul.msk.f32.vlgmr.msra.gmra.mxu2 %vm435_vm0, %v431_v20  ;;  %v851_v20 = vstv %s2064_s16  ;;  %s3048_s16 = sld [smem:[#allocation13 + $0x15]] }
 0x145   : > { %2062 = vmatmul.msk.f32.gmra.mxu2 %vm435_vm0, %v432_v22 }
 0x14a   : > { %v572_v37 = vpop.f32.mrf.mxu1 }
 0x14b   : > { %743 = vrot.lane.b32.xlu1 %v572_v37, %s2533_s13  ;;  %2072 = vmatmul.msk.f32.vlgmr.msra.gmra.mxu3 %vm835_vm1, %v572_v37 }
 0x152   : > { %v575_v38 = vpop.f32.mrf.mxu1 }
 0x153   : > { %763 = vrot.lane.b32.xlu1 %v575_v38, %s2533_s13 }
 0x160   : > { %v595_v39 = vpop.f32.mrf.mxu2 }
 0x161   : > { %745 = vrot.lane.b32.xlu1 %v595_v39, %s2533_s13  ;;  %2073 = vmatmul.msk.f32.gmra.mxu3 %vm835_vm1, %v595_v39 }
 0x168   : > { %v598_v40 = vpop.f32.mrf.mxu2 }
 0x169   : > { %765 = vrot.lane.b32.xlu2 %v598_v40, %s2533_s13 }
 0x170   : > { %v618_v41 = vpop.f32.mrf.mxu3 }
 0x171   : > { %747 = vrot.lane.b32.xlu0 %v618_v41, %s2533_s13  ;;  %2074 = vmatmul.msk.f32.gmra.mxu3 %vm835_vm1, %v618_v41 }
 0x178   : > { %v2779_v42 = vpop.f32.mrf.mxu3 }
 0x179   : > { %767 = vrot.lane.b32.xlu0 %v2779_v42, %s2533_s13 }
 0x17a   : > { %v2783_v43 = vpop.f32.mrf.mxu1 }
 0x17b   : > { %749 = vrot.lane.b32.xlu2 %v2783_v43, %s2533_s13  ;;  %2075 = vmatmul.msk.f32.gmra.mxu3 %vm835_vm1, %v2783_v43 }
 0x182   : > { %v2789_v44 = vpop.f32.mrf.mxu1 }
 0x183   : > { %769 = vrot.lane.b32.xlu1 %v2789_v44, %s2533_s13 }
 0x190   : > { %v664_v45 = vpop.f32.mrf.mxu2 }
 0x191   : > { %v787_v46 = vsub.f32 %v664_v45, %v572_v37  ;;  %2076 = vmatmul.msk.f32.gmra.mxu3 %vm835_vm1, %v664_v45 }
 0x193   : > { %v791_v47 = vand.u32 2147483647, %v787_v46 }
 0x195   : > { %799 = vrot.lane.b32.xlu2 %v791_v47, %s2533_s13 }
 0x198   : > { %v667_v48 = vpop.f32.mrf.mxu2 }
 0x199   : > { %v779_v49 = vsub.f32 %v667_v48, %v575_v38 }
 0x19b   : > { %v2795_v50 = vand.u32 2147483647, %v779_v49 }
 0x19d   : > { %819 = vrot.lane.b32.xlu1 %v2795_v50, %s2533_s13 }
 0x1a0   : > { %v687_v51 = vpop.f32.mrf.mxu3 }
 0x1a1   : > { %v788_v52 = vsub.f32 %v687_v51, %v595_v39  ;;  %2077 = vmatmul.msk.f32.gmra.mxu3 %vm835_vm1, %v687_v51 }
 0x1a3   : > { %v792_v53 = vand.u32 2147483647, %v788_v52 }
 0x1a5   : > { %801 = vrot.lane.b32.xlu0 %v792_v53, %s2533_s13 }
 0x1a8   : > { %v690_v54 = vpop.f32.mrf.mxu3 }
 0x1a9   : > { %v780_v55 = vsub.f32 %v690_v54, %v598_v40 }
 0x1aa   : > { %v710_v56 = vpop.f32.mrf.mxu1 }
 0x1ab   : > { %v2801_v57 = vand.u32 2147483647, %v780_v55  ;;  %v789_v58 = vsub.f32 %v710_v56, %v618_v41  ;;  %2078 = vmatmul.msk.f32.gmra.mxu3 %vm835_vm1, %v710_v56 }
 0x1ad   : > { %v793_v59 = vand.u32 2147483647, %v789_v58  ;;  %821 = vrot.lane.b32.xlu2 %v2801_v57, %s2533_s13 }
 0x1af   : > { %803 = vrot.lane.b32.xlu0 %v793_v59, %s2533_s13 }
 0x1bd   : > { %v744_v60 = vpop.permute.xlu1 %743 }
 0x1be   : > { %v755_v62 = vadd.f32 %v744_v60, %v575_v38 }
 0x1c0   : > { %v2807_v61 = vpop.f32.mrf.mxu2 }
 0x1c1   : > { %2079 = vmatmul.msk.f32.gmra.mxu3 %vm835_vm1, %v2807_v61 }
 0x1c3   : > { %v766_v7 = vpop.permute.xlu2 %765 }
 0x1c5   : > { %v764_v63 = vpop.permute.xlu1 %763 }
 0x1c6   : > { %v775_v0 = vadd.f32 %v764_v63, %v755_v62 }
 0x1c8   : > { %v845_v11 = vmul.f32 %v844_v5, %v775_v0  ;;  %v879_v12 = vmul.f32 %v878_v6, %v775_v0 }
 0x1ce   : > { %v964_v2 = vpop.f32.mrf.mxu3 }
 0x1cf   : > { %1006 = vmatpush.msrb.mxu1 %v964_v2 }
 0x1d0   : > { %2080 = vmatmul.msk.f32.vlgmr.msrb.gmra.mxu1 %vm835_vm1, %v2811_v1 }
 0x1d3   : > { %v746_v3 = vpop.permute.xlu1 %745 }
 0x1d4   : > { %v756_v4 = vadd.f32 %v746_v3, %v598_v40 }
 0x1d5   : > { %v750_v28 = vpop.permute.xlu2 %749 }
 0x1d6   : > { %v776_v10 = vadd.f32 %v766_v7, %v756_v4  ;;  %v758_v29 = vadd.f32 %v750_v28, %v2789_v44 }
 0x1d8   : > { %v848_v13 = vmul.f32 %v847_v8, %v776_v10  ;;  %v882_v14 = vmul.f32 %v881_v9, %v776_v10 }
 0x1da   : > { %v849_v15 = vadd.f32 %v848_v13, %v845_v11  ;;  %v883_v16 = vadd.f32 %v882_v14, %v879_v12 }
 0x1e3   : > { %v748_v17 = vpop.permute.xlu0 %747 }
 0x1e4   : > { %v967_v18 = vpop.f32.mrf.mxu3  ;;  %v757_v19 = vadd.f32 %v748_v17, %v2779_v42 }
 0x1e5   : > { %1026 = vmatpush.msrb.mxu2 %v967_v18 }
 0x1e6   : > { %2081 = vmatmul.msk.f32.vlgmr.msrb.gmra.mxu2 %vm835_vm1, %v2811_v1 }
 0x1eb   : > { %v768_v22 = vpop.permute.xlu0 %767 }
 0x1ec   : > { %v777_v23 = vadd.f32 %v768_v22, %v757_v19  ;;  %v1334_v22 = vld [vmem:[#allocation11] sm:$0xf] }
 0x1ed   : > { %2110 = vmatpush.msk.msrb.mxu3 %vm1338_vm10, %v1334_v22 }
 0x1ee   : > { %v852_v24 = vmul.f32 %v851_v20, %v777_v23  ;;  %v886_v25 = vmul.f32 %v885_v21, %v777_v23 }
 0x1ef   : > { %v800_v55 = vpop.permute.xlu2 %799 }
 0x1f0   : > { %v853_v26 = vadd.f32 %v852_v24, %v849_v15  ;;  %v887_v27 = vadd.f32 %v886_v25, %v883_v16  ;;  %v811_v7 = vadd.f32 %v800_v55, %v2795_v50  ;;  %v2841_v24 = vpop.f32.mrf.mxu1 }
 0x1f4   : > { %v970_v30 = vpop.f32.mrf.mxu3 }
 0x1f5   : > { %v770_v33 = vpop.permute.xlu1 %769  ;;  %1046 = vmatpush.msra.mxu1 %v970_v30 }
 0x1f6   : > { %v778_v34 = vadd.f32 %v770_v33, %v758_v29  ;;  %2082 = vmatmul.msk.f32.vlgmr.msra.gmra.mxu1 %vm835_vm1, %v2811_v1 }
 0x1f8   : > { %v856_v35 = vmul.f32 %v855_v31, %v778_v34  ;;  %v890_v36 = vmul.f32 %v889_v32, %v778_v34 }
 0x1fa   : > { %v857_v37 = vadd.f32 %v856_v35, %v853_v26  ;;  %v891_v38 = vadd.f32 %v890_v36, %v887_v27 }
 0x1fc   : > { %v2066_v39 = vmul.f32 -1.442695, %v857_v37  ;;  %v2071_v40 = vmul.f32 -1.442695, %v891_v38 }
 0x1fe   : > { %2254 = vpow2.f32 %v2066_v39  ;;  %v973_v41 = vpop.f32.mrf.mxu3 }
 0x1ff   : > { %2256 = vpow2.f32 %v2071_v40  ;;  %1066 = vmatpush.msra.mxu2 %v973_v41 }
 0x200   : > { %2083 = vmatmul.msk.f32.vlgmr.msra.gmra.mxu2 %vm835_vm1, %v2811_v1 }
 0x204   : > { %v2255_v45 = vpop.eup %2254 }
 0x205   : > { %v2257_v46 = vpop.eup %2256  ;;  %v861_v47 = vadd.f32 1.0, %v2255_v45 }
 0x206   : > { %v895_v48 = vadd.f32 1.0, %v2257_v46 }
 0x207   : > { %2258 = vrcp.f32 %v861_v47  ;;  %v873_v56 = vand.u32 2147483648, %v861_v47  ;;  %v871_v60 = vand.u32 2147483647, %v861_v47  ;;  %vm867_vm4 = vweird.f32 %v861_v47  ;;  %v822_v16 = vpop.permute.xlu2 %821 }
 0x208   : > { %2260 = vrcp.f32 %v895_v48  ;;  %v907_v62 = vand.u32 2147483648, %v895_v48  ;;  %v905_v0 = vand.u32 2147483647, %v895_v48  ;;  %vm901_vm6 = vweird.f32 %v895_v48 }
 0x209   : > { %v874_v5 = vor.u32 1.1754944e-38, %v873_v56  ;;  %vm872_vm7 = vcmp.eq.f32.partialorder %v871_v60, 8.507059e+37 }
 0x20a   : > { %v908_v9 = vor.u32 1.1754944e-38, %v907_v62  ;;  %vm906_vm9 = vcmp.eq.f32.partialorder %v905_v0, 8.507059e+37 }
 0x20d   : > { %v2259_v49 = vpop.eup %2258 }
 0x20e   : > { %v2261_v51 = vpop.eup %2260  ;;  %v863_v52 = vmul.f32 %v2259_v49, %v861_v47  ;;  %vm868_vm2 = vweird.f32 %v2259_v49 }
 0x20f   : > { %v897_v53 = vmul.f32 %v2261_v51, %v895_v48  ;;  %vm902_vm3 = vweird.f32 %v2261_v51  ;;  %v820_v4 = vpop.permute.xlu1 %819  ;;  %vm869_vm5 = vmor %vm867_vm4, %vm868_vm2 }
 0x210   : > { %v864_v54 = vsub.f32 1.0, %v863_v52  ;;  %vm903_vm8 = vmor %vm901_vm6, %vm902_vm3  ;;  %v831_v13 = vadd.f32 %v820_v4, %v811_v7  ;;  %v781_v7 = vsub.f32 %v2841_v24, %v2779_v42  ;;  %vm1320_vm6 = vcmask 27648  }
 0x211   : > { %v898_v58 = vsub.f32 1.0, %v897_v53 }
 0x212   : > { %v865_v59 = vmul.f32 %v2259_v49, %v864_v54  ;;  %v836_v18 = vsel %vm835_vm1, %v831_v13, 0.0 }
 0x213   : > { %v899_v63 = vmul.f32 %v2261_v51, %v898_v58 }
 0x214   : > { %v976_v2 = vpop.f32.mrf.mxu3  ;;  %v866_v3 = vadd.f32 %v2259_v49, %v865_v59 }
 0x215   : > { %1086 = vmatpush.msrb.mxu1 %v976_v2  ;;  %v900_v6 = vadd.f32 %v2261_v51, %v899_v63 }
 0x216   : > { %2084 = vmatmul.msk.f32.vlgmr.msrb.gmra.mxu1 %vm835_vm1, %v2811_v1  ;;  %v870_v8 = vsel %vm869_vm5, %v2259_v49, %v866_v3  ;;  %v1333_v49 = vld [vmem:[%s3147_s5] sm:$0xf] }
 0x217   : > { %v802_v10 = vpop.permute.xlu0 %801  ;;  %v875_v11 = vsel %vm872_vm7, %v874_v5, %v870_v8  ;;  %v904_v12 = vsel %vm903_vm8, %v2261_v51, %v900_v6  ;;  %v2953_v8 = vand.u32 2147483647, %v781_v7  ;;  %vm1795_vm7 = vcmask 11266  }
 0x218   : > { %v812_v14 = vadd.f32 %v802_v10, %v2801_v57  ;;  %v909_v15 = vsel %vm906_vm9, %v908_v9, %v904_v12  ;;  %v790_v12 = vsub.f32 %v2807_v61, %v2783_v43 }
 0x219   : > { %v2828_v17 = vadd.f32 %v909_v15, %v875_v11 }
 0x21a   : > { %v832_v50 = vadd.f32 %v822_v16, %v812_v14  ;;  %v794_v15 = vand.u32 2147483647, %v790_v12 }
 0x21c   : > { %v837_v19 = vsel %vm835_vm1, %v832_v50, 0.0 }
 0x21d   : > { %v2832_v20 = vadd.f32 %v837_v19, %v836_v18 }
 0x221   : > { %v2964_v10 = vpop.permute.xlu0 %803 }
 0x224   : > { %v979_v21 = vpop.f32.mrf.mxu3 }
 0x225   : > { %1106 = vmatpush.msrb.mxu2 %v979_v21 }
 0x226   : > { %2085 = vmatmul.msk.f32.vlgmr.msrb.gmra.mxu2 %vm835_vm1, %v2811_v1 }
 0x22e   : > { %v982_v23 = vpop.f32.mrf.mxu3 }
 0x22f   : > { %1126 = vmatpush.msra.mxu1 %v982_v23 }
 0x230   : > { %2086 = vmatmul.msk.f32.vlgmr.msra.gmra.mxu1 %vm835_vm1, %v2811_v1 }
 0x231   : > { %2098 = vmatpush.msk.msrb.mxu1 %vm1338_vm10, %v1334_v22 }
 0x233   : > { %2102 = vmatpush.msk.msra.mxu1 %vm1338_vm10, %v1334_v22 }
 0x244   : > { %v985_v57 = vpop.f32.mrf.mxu3 }
 0x245   : > { %1146 = vmatpush.msra.mxu2 %v985_v57 }
 0x246   : > { %2087 = vmatmul.msk.f32.vlgmr.msra.gmra.mxu2 %vm835_vm1, %v2811_v1  ;;  %v2856_v1 = vpop.f32.mrf.mxu2 }
 0x247   : > { %2100 = vmatpush.msk.msrb.mxu2 %vm1338_vm10, %v1334_v22 }
 0x249   : > { %2104 = vmatpush.msk.msra.mxu2 %vm1338_vm10, %v1334_v22 }
 0x24d   : > { %v2847_v25 = vpop.f32.mrf.mxu1 }
 0x24e   : > { %2099 = vmatmul.msk.f32.vlgmr.msrb.gmra.mxu1 %vm1335_vm11, %v2847_v25  ;;  %v1155_v26 = vrot.slane %v2847_v25, 4  ;;  %1175 = vrot.lane.b32.xlu2 %v2847_v25, %s2534_s30 }
 0x24f   : > { %2106 = vmatpush.msk.msrb.mxu1 %vm1338_vm10, %v1334_v22 }
 0x250   : > { %1159 = vrot.lane.b32.xlu0 %v1155_v26, %s2534_s30  ;;  %v782_v26 = vsub.f32 %v2856_v1, %v2789_v44  ;;  %v1251_v1 = vstv %s2978_s20 }
 0x269   : > { %v2858_v27 = vpop.f32.mrf.mxu2 }
 0x26a   : > { %1177 = vrot.lane.b32.xlu0 %v2858_v27, %s2534_s30  ;;  %2101 = vmatmul.msk.f32.vlgmr.msrb.gmra.mxu2 %vm1335_vm11, %v2858_v27  ;;  %v1156_v28 = vrot.slane %v2858_v27, 4 }
 0x26b   : > { %2108 = vmatpush.msk.msrb.mxu2 %vm1338_vm10, %v1334_v22 }
 0x272   : > { %1161 = vrot.lane.b32.xlu0 %v1156_v28, %s2534_s30 }
 0x273   : > { %v2867_v29 = vpop.f32.mrf.mxu1 }
 0x274   : > { %1179 = vrot.lane.b32.xlu1 %v2867_v29, %s2534_s30  ;;  %2103 = vmatmul.msk.f32.vlgmr.msra.gmra.mxu1 %vm1335_vm11, %v2867_v29  ;;  %v1157_v30 = vrot.slane %v2867_v29, 4 }
 0x275   : > { %2112 = vmatpush.msk.msra.mxu1 %vm1338_vm10, %v1334_v22 }
 0x276   : > { %1163 = vrot.lane.b32.xlu2 %v1157_v30, %s2534_s30 }
 0x283   : > { %v2876_v31 = vpop.f32.mrf.mxu2 }
 0x284   : > { %2105 = vmatmul.msk.f32.vlgmr.msra.gmra.mxu2 %vm1335_vm11, %v2876_v31  ;;  %v1158_v32 = vrot.slane %v2876_v31, 4  ;;  %1181 = vrot.lane.b32.xlu1 %v2876_v31, %s2534_s30 }
 0x286   : > { %1165 = vrot.lane.b32.xlu0 %v1158_v32, %s2534_s30 }
 0x293   : > { %v1088_v33 = vpop.f32.mrf.mxu1 }
 0x294   : > { %v1191_v34 = vsub.f32 %v1088_v33, %v2847_v25  ;;  %2107 = vmatmul.msk.f32.vlgmr.msrb.gmra.mxu1 %vm1335_vm11, %v1088_v33  ;;  %v3004_v33 = vand.u32 2147483647, %v782_v26 }
 0x296   : > { %v2886_v35 = vand.u32 2147483647, %v1191_v34 }
 0x298   : > { %1223 = vrot.lane.b32.xlu2 %v2886_v35, %s2534_s30  ;;  %v1203_v36 = vrot.slane %v2886_v35, 4 }
 0x29a   : > { %1207 = vrot.lane.b32.xlu0 %v1203_v36, %s2534_s30 }
 0x2a8   : > { %v1176_v61 = vpop.permute.xlu2 %1175 }
 0x2a9   : > { %v1108_v37 = vpop.f32.mrf.mxu2 }
 0x2aa   : > { %v1192_v38 = vsub.f32 %v1108_v37, %v2858_v27  ;;  %2109 = vmatmul.msk.f32.vlgmr.msrb.gmra.mxu2 %vm1335_vm11, %v1108_v37  ;;  %v1285_v37 = vstv %s2982_s10 }
 0x2ac   : > { %v2894_v39 = vand.u32 2147483647, %v1192_v38  ;;  %v1248_v38 = vstv %s2984_s19 }
 0x2ad   : > { %v1128_v40 = vpop.f32.mrf.mxu1 }
 0x2ae   : > { %v1193_v41 = vsub.f32 %v1128_v40, %v2867_v29  ;;  %2111 = vmatmul.msk.f32.vlgmr.msrb.gmra.mxu3 %vm1335_vm11, %v1128_v40  ;;  %1225 = vrot.lane.b32.xlu0 %v2894_v39, %s2534_s30  ;;  %v1204_v45 = vrot.slane %v2894_v39, 4 }
 0x2b0   : > { %1209 = vrot.lane.b32.xlu1 %v1204_v45, %s2534_s30  ;;  %v2902_v46 = vand.u32 2147483647, %v1193_v41  ;;  %v1282_v45 = vstv %s2989_s23 }
 0x2b2   : > { %v1205_v47 = vrot.slane %v2902_v46, 4 }
 0x2b8   : > { %1211 = vrot.lane.b32.xlu1 %v1205_v47, %s2534_s30 }
 0x2c2   : > { %v1160_v16 = vpop.permute.xlu0 %1159 }
 0x2c3   : > { %v1171_v28 = vadd.f32 %v1160_v16, %v2847_v25 }
 0x2c5   : > { %v1187_v36 = vadd.f32 %v1176_v61, %v1171_v28 }
 0x2c9   : > { %v1148_v48 = vpop.f32.mrf.mxu2 }
 0x2ca   : > { %2113 = vmatmul.msk.f32.vlgmr.msra.gmra.mxu1 %vm1335_vm11, %v1148_v48  ;;  %v1194_v63 = vsub.f32 %v1148_v48, %v2876_v31 }
 0x2cb   : > { %v1359_v51 = vpop.f32.mrf.mxu1 }
 0x2cc   : > { %2114 = vmatpush.msk.msra.mxu2 %vm1338_vm10, %v1359_v51  ;;  %v2940_v4 = vand.u32 2147483647, %v1194_v63  ;;  %v1249_v51 = vmul.f32 %v1248_v38, %v1187_v36 }
 0x2cd   : > { %2115 = vmatmul.msk.f32.vlgmr.msra.gmra.mxu2 %vm1335_vm11, %v1333_v49 }
 0x2ce   : > { %v1206_v5 = vrot.slane %v2940_v4, 4 }
 0x2d0   : > { %v1164_v44 = vpop.permute.xlu2 %1163 }
 0x2d1   : > { %v1173_v47 = vadd.f32 %v1164_v44, %v2867_v29 }
 0x2dc   : > { %v1178_v18 = vpop.permute.xlu0 %1177 }
 0x2e4   : > { %v1162_v21 = vpop.permute.xlu0 %1161 }
 0x2e5   : > { %v1172_v24 = vadd.f32 %v1162_v21, %v2858_v27 }
 0x2e6   : > { %v1180_v23 = vpop.permute.xlu1 %1179 }
 0x2e7   : > { %v1188_v32 = vadd.f32 %v1178_v18, %v1172_v24 }
 0x2e9   : > { %v1252_v48 = vmul.f32 %v1251_v1, %v1188_v32 }
 0x2ed   : > { %v1381_v52 = vpop.f32.mrf.mxu2 }
 0x2ee   : > { %2116 = vmatpush.msk.msra.mxu3 %vm1338_vm10, %v1381_v52  ;;  %v1189_v52 = vadd.f32 %v1180_v23, %v1173_v47 }
 0x2ef   : > { %2117 = vmatmul.msk.f32.vlgmr.msra.gmra.mxu3 %vm1335_vm11, %v1333_v49 }
 0x2f1   : > { %v1403_v53 = vpop.f32.mrf.mxu1 }
 0x2f2   : > { %2118 = vmatpush.msk.msrb.mxu1 %vm1338_vm10, %v1403_v53 }
 0x2f3   : > { %2119 = vmatmul.msk.f32.vlgmr.msrb.gmra.mxu1 %vm1335_vm11, %v1333_v49 }
 0x2f6   : > { %v1182_v40 = vpop.permute.xlu1 %1181 }
 0x2f8   : > { %v1166_v30 = vpop.permute.xlu0 %1165 }
 0x2f9   : > { %v1174_v25 = vadd.f32 %v1166_v30, %v2876_v31 }
 0x2fb   : > { %v1190_v53 = vadd.f32 %v1182_v40, %v1174_v25 }
 0x307   : > { %v1425_v54 = vpop.f32.mrf.mxu2 }
 0x308   : > { %2120 = vmatpush.msk.msrb.mxu2 %vm1338_vm10, %v1425_v54  ;;  %v1283_v54 = vmul.f32 %v1282_v45, %v1187_v36 }
 0x309   : > { %2121 = vmatmul.msk.f32.vlgmr.msrb.gmra.mxu2 %vm1335_vm11, %v1333_v49 }
 0x311   : > { %v1448_v55 = vpop.f32.mrf.mxu1 }
 0x312   : > { %2122 = vmatpush.msk.msrb.mxu3 %vm1338_vm10, %v1448_v55  ;;  %v1255_v55 = vstv %s2994_s25 }
 0x313   : > { %2123 = vmatmul.msk.f32.vlgmr.msrb.gmra.mxu3 %vm1335_vm11, %v1333_v49  ;;  %v1256_v29 = vmul.f32 %v1255_v55, %v1189_v52 }
 0x322   : > { %v1210_v16 = vpop.permute.xlu1 %1209 }
 0x32a   : > { %v1212_v26 = vpop.permute.xlu1 %1211 }
 0x32d   : > { %v1471_v56 = vpop.f32.mrf.mxu2 }
 0x32e   : > { %2124 = vmatpush.msk.msra.mxu1 %vm1338_vm10, %v1471_v56  ;;  %v1259_v56 = vstv %s3000_s18 }
 0x32f   : > { %2125 = vmatmul.msk.f32.vlgmr.msra.gmra.mxu1 %vm1335_vm11, %v1333_v49 }
 0x331   : > { %v1494_v58 = vpop.f32.mrf.mxu3 }
 0x332   : > { %2126 = vmatpush.msk.msra.mxu2 %vm1338_vm10, %v1494_v58  ;;  %v1289_v58 = vstv %s2998_s26 }
 0x333   : > { %2127 = vmatmul.msk.f32.vlgmr.msra.gmra.mxu2 %vm1335_vm11, %v1333_v49 }
 0x347   : > { %v1517_v59 = vpop.f32.mrf.mxu1 }
 0x348   : > { %2128 = vmatpush.msk.msra.mxu3 %vm1338_vm10, %v1517_v59  ;;  %v1253_v59 = vadd.f32 %v1252_v48, %v1249_v51  ;;  %v1220_v48 = vadd.f32 %v1210_v16, %v2894_v39 }
 0x349   : > { %2129 = vmatmul.msk.f32.vlgmr.msra.gmra.mxu3 %vm1335_vm11, %v1333_v49  ;;  %v1286_v49 = vmul.f32 %v1285_v37, %v1188_v32 }
 0x34a   : > { %v1257_v7 = vadd.f32 %v1256_v29, %v1253_v59 }
 0x34b   : > { %v1287_v63 = vadd.f32 %v1286_v49, %v1283_v54 }
 0x350   : > { %v2926_v60 = vpop.f32.mrf.mxu2 }
 0x351   : > { %v1711_v62 = vrot.slane %v2926_v60, 6  ;;  %1731 = vrot.lane.b32.xlu0 %v2926_v60, %s2535_s22 }
 0x353   : > { %1715 = vrot.lane.b32.xlu1 %v1711_v62, %s2535_s22  ;;  %v1293_v62 = vstv %s3002_s9 }
 0x370   : > { %v2933_v0 = vpop.f32.mrf.mxu1 }
 0x371   : > { %1735 = vrot.lane.b32.xlu0 %v2933_v0, %s2535_s22  ;;  %v1713_v2 = vrot.slane %v2933_v0, 6 }
 0x372   : > { %v2938_v3 = vpop.f32.mrf.mxu3 }
 0x373   : > { %1719 = vrot.lane.b32.xlu2 %v1713_v2, %s2535_s22  ;;  %1733 = vrot.lane.b32.xlu1 %v2938_v3, %s2535_s22  ;;  %v1712_v6 = vrot.slane %v2938_v3, 6  ;;  %v1260_v2 = vmul.f32 %v1259_v56, %v1190_v53  ;;  %v1221_v56 = vadd.f32 %v1212_v26, %v2902_v46 }
 0x379   : > { %1213 = vrot.lane.b32.xlu0 %v1206_v5, %s2534_s30  ;;  %v1290_v5 = vmul.f32 %v1289_v58, %v1189_v52 }
 0x37b   : > { %1717 = vrot.lane.b32.xlu2 %v1712_v6, %s2535_s22  ;;  %1227 = vrot.lane.b32.xlu1 %v2902_v46, %s2534_s30  ;;  %v1294_v6 = vmul.f32 %v1293_v62, %v1190_v53 }
 0x381   : > { %823 = vrot.lane.b32.xlu0 %v2953_v8, %s2533_s13 }
 0x383   : > { %1229 = vrot.lane.b32.xlu1 %v2940_v4, %s2534_s30  ;;  %s3074_s30 = sld [smem:[#allocation13 + $0x16]] }
 0x38c   : > { %v2959_v9 = vpop.f32.mrf.mxu2 }
 0x38d   : > { %1737 = vrot.lane.b32.xlu2 %v2959_v9, %s2535_s22  ;;  %v1714_v42 = vrot.slane %v2959_v9, 6 }
 0x395   : > { %1721 = vrot.lane.b32.xlu2 %v1714_v42, %s2535_s22  ;;  %v1291_v42 = vadd.f32 %v1290_v5, %v1287_v63 }
 0x396   : > { %v1635_v11 = vpop.f32.mrf.mxu3 }
 0x397   : > { %v1747_v13 = vsub.f32 %v1635_v11, %v2926_v60  ;;  %v1261_v11 = vadd.f32 %v1260_v2, %v1257_v7  ;;  %v1295_v12 = vadd.f32 %v1294_v6, %v1291_v42 }
 0x399   : > { %v2970_v14 = vand.u32 2147483647, %v1747_v13  ;;  %v2092_v13 = vmul.f32 -1.442695, %v1261_v11 }
 0x39b   : > { %v1759_v50 = vrot.slane %v2970_v14, 6  ;;  %1779 = vrot.lane.b32.xlu0 %v2970_v14, %s2535_s22  ;;  %2262 = vpow2.f32 %v2092_v13 }
 0x39d   : > { %805 = vrot.lane.b32.xlu2 %v794_v15, %s2533_s13  ;;  %1763 = vrot.lane.b32.xlu1 %v1759_v50, %s2535_s22  ;;  %v2097_v15 = vmul.f32 -1.442695, %v1295_v12 }
 0x39f   : > { %2264 = vpow2.f32 %v2097_v15 }
 0x3a1   : > { %v2263_v23 = vpop.eup %2262 }
 0x3a2   : > { %v3030_v24 = vadd.f32 1.0, %v2263_v23 }
 0x3a4   : > { %2266 = vrcp.f32 %v3030_v24  ;;  %v1277_v54 = vand.u32 2147483648, %v3030_v24  ;;  %vm1271_vm15 = vweird.f32 %v3030_v24  ;;  %v1275_v46 = vand.u32 2147483647, %v3030_v24 }
 0x3a6   : > { %v1278_v6 = vor.u32 1.1754944e-38, %v1277_v54  ;;  %vm1276_vm4 = vcmp.eq.f32.partialorder %v1275_v46, 8.507059e+37  ;;  %v1845_v54 = vstv %s3074_s30 }
 0x3ac   : > { %v1658_v19 = vpop.f32.mrf.mxu1 }
 0x3ad   : > { %v1748_v43 = vsub.f32 %v1658_v19, %v2938_v3  ;;  %v1208_v19 = vpop.permute.xlu0 %1207 }
 0x3ae   : > { %v1219_v49 = vadd.f32 %v1208_v19, %v2886_v35 }
 0x3af   : > { %v2980_v22 = vand.u32 2147483647, %v1748_v43  ;;  %v1224_v43 = vpop.permute.xlu2 %1223 }
 0x3b0   : > { %v1235_v59 = vadd.f32 %v1224_v43, %v1219_v49 }
 0x3b1   : > { %1781 = vrot.lane.b32.xlu1 %v2980_v22, %s2535_s22  ;;  %v1760_v57 = vrot.slane %v2980_v22, 6 }
 0x3b2   : > { %v1240_v42 = vsel %vm1239_vm14, %v1235_v59, 0.0 }
 0x3b3   : > { %1765 = vrot.lane.b32.xlu2 %v1760_v57, %s2535_s22  ;;  %v2265_v57 = vpop.eup %2264 }
 0x3b4   : > { %v1299_v28 = vadd.f32 1.0, %v2265_v57  ;;  %v2267_v44 = vpop.eup %2266 }
 0x3b5   : > { %v1226_v30 = vpop.permute.xlu0 %1225  ;;  %v1267_v37 = vmul.f32 %v2267_v44, %v3030_v24  ;;  %vm1272_vm12 = vweird.f32 %v2267_v44 }
 0x3b6   : > { %v1681_v27 = vpop.f32.mrf.mxu2  ;;  %2268 = vrcp.f32 %v1299_v28  ;;  %v1236_v55 = vadd.f32 %v1226_v30, %v1220_v48  ;;  %v1311_v58 = vand.u32 2147483648, %v1299_v28  ;;  %vm3053_vm0 = vmor %vm1271_vm15, %vm1272_vm12  ;;  %vm1305_vm2 = vweird.f32 %v1299_v28 }
 0x3b7   : > { %v1749_v34 = vsub.f32 %v1681_v27, %v2933_v0  ;;  %v1268_v45 = vsub.f32 1.0, %v1267_v37  ;;  %v1309_v2 = vand.u32 2147483647, %v1299_v28  ;;  %v1838_v37 = vstv %s3059_s14 }
 0x3b8   : > { %v1241_v5 = vsel %vm1239_vm14, %v1236_v55, 0.0  ;;  %v1312_v13 = vor.u32 1.1754944e-38, %v1311_v58 }
 0x3b9   : > { %v3011_v41 = vand.u32 2147483647, %v1749_v34  ;;  %825 = vrot.lane.b32.xlu1 %v3004_v33, %s2533_s13  ;;  %v1269_v51 = vmul.f32 %v2267_v44, %v1268_v45  ;;  %s3046_s13 = sld [smem:[#allocation13 + $0x11]]  ;;  %v1242_v19 = vadd.f32 %v1241_v5, %v1240_v42  ;;  %vm1310_vm5 = vcmp.eq.f32.partialorder %v1309_v2, 8.507059e+37 }
 0x3bb   : > { %1783 = vrot.lane.b32.xlu0 %v3011_v41, %s2535_s22  ;;  %v1761_v31 = vrot.slane %v3011_v41, 6  ;;  %v1270_v62 = vadd.f32 %v2267_v44, %v1269_v51  ;;  %v1811_v51 = vstv %s3066_s11 }
 0x3bc   : > { %v2269_v34 = vpop.eup %2268 }
 0x3bd   : > { %1767 = vrot.lane.b32.xlu2 %v1761_v31, %s2535_s22  ;;  %v1301_v25 = vmul.f32 %v2269_v34, %v1299_v28  ;;  %vm1306_vm13 = vweird.f32 %v2269_v34  ;;  %v1274_v11 = vsel %vm3053_vm0, %v2267_v44, %v1270_v62  ;;  %v1841_v28 = vstv %s3048_s16 }
 0x3be   : > { %vm3061_vm3 = vmor %vm1305_vm2, %vm1306_vm13  ;;  %v1279_v23 = vsel %vm1276_vm4, %v1278_v6, %v1274_v11  ;;  %v1804_v44 = vstv %s3051_s27  ;;  %vm1890_vm0 = vcmask 0  }
 0x3bf   : > { %v1302_v47 = vsub.f32 1.0, %v1301_v25  ;;  %v1807_v24 = vstv %s3046_s13  ;;  %s414_s13 = scalar_lea.vmem %s3150_s8, %s3168_s12 }
 0x3c1   : > { %v1303_v52 = vmul.f32 %v2269_v34, %v1302_v47 }
 0x3c3   : > { %v1732_v1 = vpop.permute.xlu0 %1731  ;;  %v1304_v63 = vadd.f32 %v2269_v34, %v1303_v52  ;;  %v1815_v52 = vstv %s3078_s21 }
 0x3c5   : > { %v1716_v27 = vpop.permute.xlu1 %1715  ;;  %v1308_v12 = vsel %vm3061_vm3, %v2269_v34, %v1304_v63 }
 0x3c6   : > { %v1727_v15 = vadd.f32 %v1716_v27, %v2926_v60  ;;  %v1313_v57 = vsel %vm1310_vm5, %v1312_v13, %v1308_v12 }
 0x3c8   : > { %v1743_v26 = vadd.f32 %v1732_v1, %v1727_v15 }
 0x3ca   : > { %v1805_v1 = vmul.f32 %v1804_v44, %v1743_v26  ;;  %v1839_v49 = vmul.f32 %v1838_v37, %v1743_v26 }
 0x3cc   : > { %v1704_v50 = vpop.f32.mrf.mxu3 }
 0x3cd   : > { %v1750_v18 = vsub.f32 %v1704_v50, %v2959_v9  ;;  %v3033_v32 = vpop.permute.xlu2 %1719 }
 0x3ce   : > { %v1729_v25 = vadd.f32 %v3033_v32, %v2933_v0 }
 0x3cf   : > { %v3026_v21 = vand.u32 2147483647, %v1750_v18 }
 0x3d1   : > { %v1762_v61 = vrot.slane %v3026_v21, 6 }
 0x3d3   : > { %1769 = vrot.lane.b32.xlu2 %v1762_v61, %s2535_s22 }
 0x3d5   : > { %v1718_v36 = vpop.permute.xlu2 %1717 }
 0x3d6   : > { %v1728_v16 = vadd.f32 %v1718_v36, %v2938_v3  ;;  %v1315_v36 = vadd.f32 %v1313_v57, %v1279_v23 }
 0x3db   : > { %1785 = vrot.lane.b32.xlu2 %v3026_v21, %s2535_s22 }
 0x3e3   : > { %v3038_v40 = vpop.permute.xlu0 %1735 }
 0x3e4   : > { %v1745_v48 = vadd.f32 %v3038_v40, %v1729_v25 }
 0x3e5   : > { %v1734_v38 = vpop.permute.xlu1 %1733 }
 0x3e6   : > { %v1744_v60 = vadd.f32 %v1734_v38, %v1728_v16  ;;  %v1812_v62 = vmul.f32 %v1811_v51, %v1745_v48  ;;  %v1846_v32 = vmul.f32 %v1845_v54, %v1745_v48 }
 0x3e7   : > { %v3042_v31 = vpop.permute.xlu2 %1737 }
 0x3e8   : > { %v1808_v38 = vmul.f32 %v1807_v24, %v1744_v60  ;;  %v1842_v45 = vmul.f32 %v1841_v28, %v1744_v60 }
 0x3ea   : > { %v1809_v55 = vadd.f32 %v1808_v38, %v1805_v1  ;;  %v1843_v58 = vadd.f32 %v1842_v45, %v1839_v49 }
 0x3eb   : > { %v1214_v39 = vpop.permute.xlu0 %1213 }
 0x3ec   : > { %v1222_v50 = vadd.f32 %v1214_v39, %v2940_v4  ;;  %v1847_v39 = vadd.f32 %v1846_v32, %v1843_v58 }
 0x3ed   : > { %v1228_v53 = vpop.permute.xlu1 %1227 }
 0x3ee   : > { %v1237_v35 = vadd.f32 %v1228_v53, %v1221_v56  ;;  %v1849_v56 = vstv %s3080_s24 }
 0x3ef   : > { %v1722_v43 = vpop.permute.xlu2 %1721 }
 0x3f0   : > { %v1243_v18 = vsel %vm1239_vm14, %v1237_v35, 0.0  ;;  %v1730_v30 = vadd.f32 %v1722_v43, %v2959_v9  ;;  %v1813_v35 = vadd.f32 %v1812_v62, %v1809_v55  ;;  %v813_v43 = vadd.f32 %v2964_v10, %v2953_v8 }
 0x3f1   : > { %v1244_v4 = vadd.f32 %v1243_v18, %v1242_v19 }
 0x3f2   : > { %v1746_v9 = vadd.f32 %v3042_v31, %v1730_v30 }
 0x3f3   : > { %v824_v12 = vpop.permute.xlu0 %823 }
 0x3f4   : > { %v1816_v0 = vmul.f32 %v1815_v52, %v1746_v9  ;;  %v1850_v63 = vmul.f32 %v1849_v56, %v1746_v9 }
 0x3f5   : > { %v1230_v61 = vpop.permute.xlu1 %1229 }
 0x3f6   : > { %v1238_v3 = vadd.f32 %v1230_v61, %v1222_v50  ;;  %v1817_v40 = vadd.f32 %v1816_v0, %v1813_v35  ;;  %v1851_v29 = vadd.f32 %v1850_v63, %v1847_v39 }
 0x3f7   : > { %v806_v7 = vpop.permute.xlu2 %805 }
 0x3f8   : > { %v1245_v27 = vsel %vm1239_vm14, %v1238_v3, 0.0  ;;  %v2134_v31 = vmul.f32 -1.442695, %v1817_v40  ;;  %v2139_v46 = vmul.f32 -1.442695, %v1851_v29  ;;  %v833_v3 = vadd.f32 %v824_v12, %v813_v43 }
 0x3f9   : > { %v1246_v34 = vadd.f32 %v1245_v27, %v1244_v4  ;;  %v814_v4 = vadd.f32 %v806_v7, %v3004_v33 }
 0x3fa   : > { %2270 = vpow2.f32 %v2134_v31  ;;  %v839_v24 = vsel %vm835_vm1, %v833_v3, 0.0 }
 0x3fb   : > { %v1316_v47 = vmul.f32 %v1315_v36, %v1246_v34  ;;  %2272 = vpow2.f32 %v2139_v46  ;;  %v840_v36 = vadd.f32 %v839_v24, %v2832_v20 }
 0x3fd   : > { %v1318_v53 = vrot.slane %v1316_v47, 4 }
 0x3ff   : > { %v1321_v59 = vsel %vm1320_vm6, %v1318_v53, 0.0 }
 0x400   : > { %1322 = vadd.xlane.f32.xlu1 %v1321_v59  ;;  %v2271_v2 = vpop.eup %2270 }
 0x401   : > { %v2273_v5 = vpop.eup %2272  ;;  %v1821_v6 = vadd.f32 1.0, %v2271_v2 }
 0x402   : > { %v1855_v42 = vadd.f32 1.0, %v2273_v5 }
 0x403   : > { %2274 = vrcp.f32 %v1821_v6  ;;  %v1833_v37 = vand.u32 2147483648, %v1821_v6  ;;  %vm1827_vm10 = vweird.f32 %v1821_v6  ;;  %v1831_v49 = vand.u32 2147483647, %v1821_v6 }
 0x404   : > { %2276 = vrcp.f32 %v1855_v42  ;;  %vm1861_vm12 = vweird.f32 %v1855_v42 }
 0x405   : > { %v1834_v55 = vor.u32 1.1754944e-38, %v1833_v37  ;;  %vm1832_vm14 = vcmp.eq.f32.partialorder %v1831_v49, 8.507059e+37 }
 0x409   : > { %v2275_v15 = vpop.eup %2274 }
 0x40a   : > { %v2277_v16 = vpop.eup %2276  ;;  %v1823_v18 = vmul.f32 %v2275_v15, %v1821_v6  ;;  %vm1828_vm8 = vweird.f32 %v2275_v15 }
 0x40b   : > { %v1857_v19 = vmul.f32 %v2277_v16, %v1855_v42  ;;  %vm1862_vm9 = vweird.f32 %v2277_v16  ;;  %vm3106_vm11 = vmor %vm1827_vm10, %vm1828_vm8 }
 0x40c   : > { %v1824_v23 = vsub.f32 1.0, %v1823_v18  ;;  %vm3111_vm13 = vmor %vm1861_vm12, %vm1862_vm9 }
 0x40d   : > { %v1766_v13 = vpop.permute.xlu2 %1765  ;;  %v1780_v61 = vpop.permute.xlu0 %1779  ;;  %v1858_v57 = vsub.f32 1.0, %v1857_v19 }
 0x40e   : > { %v1825_v28 = vmul.f32 %v2275_v15, %v1824_v23  ;;  %v1776_v27 = vadd.f32 %v1766_v13, %v2980_v22 }
 0x40f   : > { %v1764_v11 = vpop.permute.xlu1 %1763  ;;  %v1859_v30 = vmul.f32 %v2277_v16, %v1858_v57 }
 0x410   : > { %v1775_v44 = vadd.f32 %v1764_v11, %v2970_v14  ;;  %v1826_v47 = vadd.f32 %v2275_v15, %v1825_v28  ;;  %v1867_v14 = vand.u32 2147483648, %v1855_v42 }
 0x411   : > { %v1860_v1 = vadd.f32 %v2277_v16, %v1859_v30 }
 0x412   : > { %v1791_v22 = vadd.f32 %v1780_v61, %v1775_v44  ;;  %v1830_v54 = vsel %vm3106_vm11, %v2275_v15, %v1826_v47  ;;  %v1868_v62 = vor.u32 1.1754944e-38, %v1867_v14 }
 0x413   : > { %v1835_v35 = vsel %vm1832_vm14, %v1834_v55, %v1830_v54 }
 0x414   : > { %v1796_v56 = vsel %vm1795_vm7, %v1791_v22, 0.0 }
 0x417   : > { %v1768_v60 = vpop.permute.xlu2 %1767 }
 0x418   : > { %v1777_v25 = vadd.f32 %v1768_v60, %v3011_v41  ;;  %v1865_v41 = vand.u32 2147483647, %v1855_v42 }
 0x41a   : > { %vm1866_vm15 = vcmp.eq.f32.partialorder %v1865_v41, 8.507059e+37 }
 0x423   : > { %v1782_v50 = vpop.permute.xlu1 %1781 }
 0x424   : > { %v1792_v38 = vadd.f32 %v1782_v50, %v1776_v27 }
 0x426   : > { %v1797_v51 = vsel %vm1795_vm7, %v1792_v38, 0.0 }
 0x427   : > { %v1798_v0 = vadd.f32 %v1797_v51, %v1796_v56 }
 0x42b   : > { %v826_v26 = vpop.permute.xlu1 %825 }
 0x42c   : > { %v834_v34 = vadd.f32 %v826_v26, %v814_v4 }
 0x42d   : > { %v1770_v8 = vpop.permute.xlu2 %1769  ;;  %v1784_v10 = vpop.permute.xlu0 %1783 }
 0x42e   : > { %v841_v45 = vsel %vm835_vm1, %v834_v34, 0.0  ;;  %v1793_v48 = vadd.f32 %v1784_v10, %v1777_v25  ;;  %v1778_v58 = vadd.f32 %v1770_v8, %v3026_v21 }
 0x42f   : > { %v842_v33 = vadd.f32 %v841_v45, %v840_v36 }
 0x430   : > { %v1799_v59 = vsel %vm1795_vm7, %v1793_v48, 0.0 }
 0x431   : > { %v912_v20 = vmul.f32 %v2828_v17, %v842_v33  ;;  %v1864_v17 = vsel %vm3111_vm13, %v2277_v16, %v1860_v1  ;;  %v1800_v40 = vadd.f32 %v1799_v59, %v1798_v0 }
 0x432   : > { %v1869_v39 = vsel %vm1866_vm15, %v1868_v62, %v1864_v17 }
 0x433   : > { %v913_v53 = vsel %vm835_vm1, %v912_v20, 0.0  ;;  %v1871_v46 = vadd.f32 %v1869_v39, %v1835_v35  ;;  %vm1876_vm1 = vcmask 9216  }
 0x434   : > { %914 = vadd.xlane.f32.xlu0 %v913_v53 }
 0x435   : > { %v1786_v32 = vpop.permute.xlu2 %1785 }
 0x436   : > { %v1794_v63 = vadd.f32 %v1786_v32, %v1778_v58 }
 0x438   : > { %v1801_v29 = vsel %vm1795_vm7, %v1794_v63, 0.0 }
 0x439   : > { %v1802_v31 = vadd.f32 %v1801_v29, %v1800_v40 }
 0x43b   : > { %v1872_v2 = vmul.f32 %v1871_v46, %v1802_v31 }
 0x43d   : > { %v1874_v5 = vrot.slane %v1872_v2, 2 }
 0x43f   : > { %v1877_v21 = vsel %vm1876_vm1, %v1874_v5, 0.0 }
 0x440   : > { %1878 = vadd.xlane.f32.xlu2 %v1877_v21 }
 0x473   : > { %v1323_v6 = vpop.xlane.xlu1 %1322 }
 0x474   : > { %v1324_v7 = vrot.slane %v1323_v6, 4 }
 0x476   : > { %v1325_v42 = vadd.f32 %v1324_v7, %v1323_v6 }
 0x478   : > { %v1326_v11 = vrot.slane %v1325_v42, 2 }
 0x47a   : > { %v1327_v16 = vadd.f32 %v1326_v11, %v1325_v42 }
 0x47c   : > { %v1328_v19 = vrot.slane %v1327_v16, 1 }
 0x47e   : > { %v1329_v3 = vadd.f32 %v1328_v19, %v1327_v16 }
 0x4a7   : > { %v915_v12 = vpop.xlane.xlu0 %914 }
 0x4a8   : > { %v916_v13 = vrot.slane %v915_v12, 4 }
 0x4aa   : > { %v917_v15 = vadd.f32 %v916_v13, %v915_v12 }
 0x4ac   : > { %v918_v50 = vrot.slane %v917_v15, 2 }
 0x4ae   : > { %v919_v18 = vadd.f32 %v918_v50, %v917_v15 }
 0x4b0   : > { %v920_v43 = vrot.slane %v919_v18, 1 }
 0x4b2   : > { %v921_v61 = vadd.f32 %v920_v43, %v919_v18 }
 0x4b3   : > { %v1879_v60 = vpop.xlane.xlu2 %1878 }
 0x4b4   : > { %v1880_v23 = vrot.slane %v1879_v60, 4  ;;  %2143 = vpush %v921_v61 }
 0x4b5   : > { %2145 = vpush %v1329_v3 }
 0x4b6   : > { %v1881_v57 = vadd.f32 %v1880_v23, %v1879_v60 }
 0x4b8   : > { %v1882_v24 = vrot.slane %v1881_v57, 2 }
 0x4ba   : > { %v1883_v4 = vadd.f32 %v1882_v24, %v1881_v57 }
 0x4bc   : > { %v1884_v26 = vrot.slane %v1883_v4, 1 }
 0x4be   : > { %v1885_v28 = vadd.f32 %v1884_v26, %v1883_v4 }
 0x4c0   : > { %2147 = vpush %v1885_v28 }
 0x4e5   : > { %s2144_s22 = spop %2143 }
 0x4e6   : > { %s2146_s20 = spop %2145  ;;  %s923_s10 = smul.f32 0.00032552084, %s2144_s22 }
 0x4e7   : > { %s1331_s19 = smul.f32 0.0013020834, %s2146_s20 }
 0x4e9   : > { %s1332_s25 = sadd.f32 %s1331_s19, %s923_s10 }
 0x4f1   : > { %s2148_s23 = spop %2147 }
 0x4f2   : > { %s1887_s26 = smul.f32 0.0052083335, %s2148_s23 }
 0x4f4   : > { %s1888_s16 = sadd.f32 %s1887_s26, %s1332_s25 }
 0x4f6   : > { %v1889_v30 = vstv %s1888_s16 }
 0x4f7   : > { %1891 = vst.msk [vmem:[%s414_s13] sm:$0x1] %vm1890_vm0, %v1889_v30 }
 0x4f8 PF: > { %p22_p3 = scmp.ge.s32.totalorder %s2656_s17, 4   ;;  %s3163_s27 = smov %s2515_s28 }
 0x4f9   : > { %s3164_s28 = smov %s2519_s29  ;;  %s3165_s29 = smov %s2667_s15 }
 0x4fa   : > { %s3166_s30 = smov %s2656_s17  ;;  %24 = sbr.rel (!%p22_p3) target bundleno = 7 (0x7), region = 117 }
 0x4ff   :  { %1909 = vsyncpa [#allocation3], 1 }
 0x500   :  { %1911 = vsyncpa [#allocation3 + $0x1], 1 }
 0x501   :  { %1912 = vsyncpa [#allocation6], 1 }
 0x502   :  { %1913 = vsyncpa [#allocation9], 1 }
 0x503   :  { %1914 = vsyncpa [#allocation12], 1 }
 0x504   :  { %1915 = vsyncpa [#allocation4], 1 }
 0x505   :  { %1917 = vsyncpa [#allocation4 + $0x1], 1 }

</bundles_post_ra>
